<compile_context>
chip_gen: v5e
topology: v5e:2x2
jax: 0.10.0
libtpu: 0.0.40
codegen_flags: <defaults>
</compile_context>

<pallas_src>
import functools
import math

import jax
import jax.numpy as jnp
from jax import lax
from jax.experimental import pallas as pl
from jax.experimental.pallas import tpu as pltpu


# ----------------------------- kernel helpers -----------------------------
def _layernorm(v, g, b, eps=1e-5):
    mu = jnp.mean(v, axis=-1, keepdims=True)
    var = jnp.mean((v - mu) ** 2, axis=-1, keepdims=True)
    return (v - mu) * lax.rsqrt(var + eps) * g + b


def _mish(v):
    # x * tanh(softplus(x)); logaddexp(v, 0) is a stable softplus
    return v * jnp.tanh(jnp.logaddexp(v, 0.0))


# -------------------------------- kernel ----------------------------------
def encoder_kernel(hidden, num_heads, nb, seq, compute_dtype,
                   ps_ref, x_ref,
                   wx_ref, bx_ref, wo_ref, bo_ref,
                   mulln_g_ref, mulln_b_ref,
                   f0_w1_ref, f0_b1_ref, f0_lng_ref, f0_lnb_ref,
                   f0_w2_ref, f0_b2_ref,
                   ln0_g_ref, ln0_b_ref,
                   f1_lng_ref, f1_lnb_ref, f1_w2_ref, f1_b2_ref,
                   ln1_g_ref, ln1_b_ref,
                   ln2_g_ref, ln2_b_ref,
                   o_ref):
    H = hidden
    NH = num_heads
    hd = H // NH
    S = seq
    rows = nb * S
    cd = compute_dtype

    x = x_ref[...].reshape(rows, H).astype(jnp.float32)       # (rows, H)
    xc = x.astype(cd)

    # --- fused x-side matmul: columns = [Q | K | V | fft1.liner1 | linear2]
    # (Q columns/bias already carry the 1/sqrt(hd) attention scale.)
    hx = jnp.dot(xc, wx_ref[...], preferred_element_type=jnp.float32) + bx_ref[...]
    q = hx[:, 0 * H:1 * H].reshape(nb, S, H)
    k = hx[:, 1 * H:2 * H].reshape(nb, S, H)
    v = hx[:, 2 * H:3 * H].reshape(nb, S, H)
    f1_hidden = hx[:, 3 * H:7 * H]                             # (rows, 4H)
    fft2 = hx[:, 7 * H:8 * H]                                  # (rows, H)

    # --- multi-head self-attention; output projection wo folded into the
    #     per-head accumulation (no concatenate, no materialized kh.T).
    wo = wo_ref[...]
    attn = jnp.zeros((rows, H), jnp.float32)
    for h in range(NH):                                        # static small loop
        sl = slice(h * hd, (h + 1) * hd)
        qh = q[..., sl].astype(cd)                             # (nb, S, hd)
        kh = k[..., sl].astype(cd)
        vh = v[..., sl].astype(cd)
        s = jnp.einsum('bqd,bkd->bqk', qh, kh,
                       preferred_element_type=jnp.float32)     # (nb, S, S)
        s = s - jnp.max(s, axis=-1, keepdims=True)
        p = jnp.exp(s)
        p = p / jnp.sum(p, axis=-1, keepdims=True)
        ah = jnp.einsum('bqk,bkd->bqd', p.astype(cd), vh,
                        preferred_element_type=jnp.float32)    # (nb, S, hd)
        attn = attn + jnp.dot(ah.reshape(rows, hd).astype(cd), wo[sl, :],
                              preferred_element_type=jnp.float32)
    attn = attn + bo_ref[...]

    main_ln = _layernorm(attn + x, mulln_g_ref[...], mulln_b_ref[...])

    # --- branch 0: FeedForward on attention output, residual, LN
    h0 = jnp.dot(main_ln.astype(cd), f0_w1_ref[...],
                 preferred_element_type=jnp.float32) + f0_b1_ref[...]
    h0 = _mish(_layernorm(h0, f0_lng_ref[...], f0_lnb_ref[...]))
    f0 = _mish(jnp.dot(h0.astype(cd), f0_w2_ref[...],
                       preferred_element_type=jnp.float32) + f0_b2_ref[...])
    ln0 = _layernorm(f0 + main_ln, ln0_g_ref[...], ln0_b_ref[...])

    # --- branch 1: FeedForward on x (first matmul already fused into hx)
    h1 = _mish(_layernorm(f1_hidden, f1_lng_ref[...], f1_lnb_ref[...]))
    f1 = _mish(jnp.dot(h1.astype(cd), f1_w2_ref[...],
                       preferred_element_type=jnp.float32) + f1_b2_ref[...])
    ln1 = _layernorm(f1 + x, ln1_g_ref[...], ln1_b_ref[...])

    # --- branch 2: linear2 on x (matmul already fused), Mish, residual, LN
    ln2 = _layernorm(_mish(fft2) + x, ln2_g_ref[...], ln2_b_ref[...])

    # --- softmax(p1,p2,p3)-weighted combination; ps read as SMEM scalars
    out = ln0 * ps_ref[0] + ln1 * ps_ref[1] + ln2 * ps_ref[2]
    o_ref[...] = out.reshape(nb, S, H).astype(o_ref.dtype)


# ------------------------------- wrapper -----------------------------------
def _pack_params(params, H, num_heads, compute_dtype):
    """Build the fused x-side weight, fold the attention scale, cast matmul
    weights to compute_dtype (biases / LN params stay f32)."""
    hd = H // num_heads
    scale = 1.0 / math.sqrt(hd)
    wqkv = params["wqkv"]                      # (H, 3H)
    bqkv = params["bqkv"]                      # (1, 3H)
    wq = wqkv[:, :H] * scale
    bq = bqkv[:, :H] * scale
    wx = jnp.concatenate([wq, wqkv[:, H:], params["f1_w1"], params["w2"]], axis=1)
    bx = jnp.concatenate([bq, bqkv[:, H:], params["f1_b1"], params["b2"]], axis=1)

    cast = lambda w: w.astype(compute_dtype)
    return [
        cast(wx), bx,
        cast(params["wo"]), params["bo"],
        params["mulln_g"], params["mulln_b"],
        cast(params["f0_w1"]), params["f0_b1"],
        params["f0_lng"], params["f0_lnb"],
        cast(params["f0_w2"]), params["f0_b2"],
        params["ln0_g"], params["ln0_b"],
        params["f1_lng"], params["f1_lnb"],
        cast(params["f1_w2"]), params["f1_b2"],
        params["ln1_g"], params["ln1_b"],
        params["ln2_g"], params["ln2_b"],
    ]


def transformer_encoder(x, params, num_heads, *, block_b=None,
                        compute_dtype=jnp.float32):
    B, S, H = x.shape
    if block_b is None:
        # pack several batch elements per program (bounded row slab).
        block_b = max(d for d in range(1, B + 1) if B % d == 0 and d * S <= 1024)
    assert B % block_b == 0

    ps = jax.nn.softmax(
        jnp.stack([params["p1"], params["p2"], params["p3"]])).astype(jnp.float32)
    weights = _pack_params(params, H, num_heads, compute_dtype)

    in_specs = [
        pl.BlockSpec(memory_space=pltpu.MemorySpace.SMEM),      # softmax(p) scalars
        pl.BlockSpec((block_b, S, H), lambda b: (b, 0, 0)),     # x block
    ]
    in_specs += [pl.BlockSpec(w.shape, lambda b, _nd=w.ndim: (0,) * _nd)
                 for w in weights]
    out_specs = pl.BlockSpec((block_b, S, H), lambda b: (b, 0, 0))

    # explicit VMEM budget: resident weights + double-buffered x/out blocks.
    weight_bytes = sum(int(w.size) * w.dtype.itemsize for w in weights)
    block_bytes = 2 * block_b * S * H * x.dtype.itemsize
    vmem_limit = int(min(64 * 1024 * 1024,
                         max(16 * 1024 * 1024,
                             2 * (weight_bytes + block_bytes) + 4 * 1024 * 1024)))

    kernel = functools.partial(encoder_kernel, H, num_heads, block_b, S,
                               compute_dtype)
    return pl.pallas_call(
        kernel,
        grid=(B // block_b,),
        in_specs=in_specs,
        out_specs=out_specs,
        out_shape=jax.ShapeDtypeStruct((B, S, H), x.dtype),
        compiler_params=pltpu.CompilerParams(
            dimension_semantics=("parallel",),   # batch programs are independent
            vmem_limit_bytes=vmem_limit),
    )(ps, x, *weights)


# -------------------------- deterministic params ---------------------------
def init_params(key, H):
    ks = jax.random.split(key, 14)

    def w(k, shape, scale=0.05):
        return (scale * jax.random.normal(k, shape)).astype(jnp.float32)

    ones = lambda n: jnp.ones((1, n), jnp.float32)
    zeros = lambda n: jnp.zeros((1, n), jnp.float32)

    return {
        # MultiheadAttention: in_proj (pre-transposed to [H, 3H]), out_proj
        "wqkv": w(ks[0], (H, 3 * H)), "bqkv": w(ks[1], (1, 3 * H)),
        "wo": w(ks[2], (H, H)), "bo": w(ks[3], (1, H)),
        "mulln_g": ones(H), "mulln_b": zeros(H),
        # fft0 (FeedForward): liner1 [H,4H], LN(4H), liner2 [4H,H]
        "f0_w1": w(ks[4], (H, 4 * H)), "f0_b1": w(ks[5], (1, 4 * H)),
        "f0_lng": ones(4 * H), "f0_lnb": zeros(4 * H),
        "f0_w2": w(ks[6], (4 * H, H)), "f0_b2": w(ks[7], (1, H)),
        "ln0_g": ones(H), "ln0_b": zeros(H),
        # fft1 (FeedForward)
        "f1_w1": w(ks[8], (H, 4 * H)), "f1_b1": w(ks[9], (1, 4 * H)),
        "f1_lng": ones(4 * H), "f1_lnb": zeros(4 * H),
        "f1_w2": w(ks[10], (4 * H, H)), "f1_b2": w(ks[11], (1, H)),
        "ln1_g": ones(H), "ln1_b": zeros(H),
        # linear2
        "w2": w(ks[12], (H, H)), "b2": w(ks[13], (1, H)),
        "ln2_g": ones(H), "ln2_b": zeros(H),
        # learnable scalars p1, p2, p3 (initialized to 0.0, as in the module)
        "p1": jnp.float32(0.0), "p2": jnp.float32(0.0), "p3": jnp.float32(0.0),
    }


# ---------------------------- pure-JAX reference ----------------------------
def ref_forward(x, params, num_heads):
    B, S, H = x.shape
    hd = H // num_heads
    ps = jax.nn.softmax(jnp.stack([params["p1"], params["p2"], params["p3"]]))

    def ln(v, g, b, eps=1e-5):
        mu = v.mean(-1, keepdims=True)
        var = ((v - mu) ** 2).mean(-1, keepdims=True)
        return (v - mu) / jnp.sqrt(var + eps) * g + b

    def mish(v):
        return v * jnp.tanh(jnp.logaddexp(v, 0.0))

    def ff(v, w1, b1, lng, lnb, w2, b2):
        h = mish(ln(v @ w1 + b1, lng, lnb))
        return mish(h @ w2 + b2)

    qkv = x @ params["wqkv"] + params["bqkv"]
    q, k, v = jnp.split(qkv, 3, axis=-1)
    q = q.reshape(B, S, num_heads, hd) / math.sqrt(hd)
    k = k.reshape(B, S, num_heads, hd)
    v = v.reshape(B, S, num_heads, hd)
    s = jnp.einsum("bqhd,bkhd->bhqk", q, k)
    p = jax.nn.softmax(s, axis=-1)
    a = jnp.einsum("bhqk,bkhd->bqhd", p, v).reshape(B, S, H)
    attn = a @ params["wo"] + params["bo"]

    main_ln = ln(attn + x, params["mulln_g"], params["mulln_b"])
    ln0 = ln(ff(main_ln, params["f0_w1"], params["f0_b1"], params["f0_lng"],
                params["f0_lnb"], params["f0_w2"], params["f0_b2"]) + main_ln,
             params["ln0_g"], params["ln0_b"])
    ln1 = ln(ff(x, params["f1_w1"], params["f1_b1"], params["f1_lng"],
                params["f1_lnb"], params["f1_w2"], params["f1_b2"]) + x,
             params["ln1_g"], params["ln1_b"])
    fft2 = x @ params["w2"] + params["b2"]
    ln2 = ln(mish(fft2) + x, params["ln2_g"], params["ln2_b"])
    return ln0 * ps[0] + ln1 * ps[1] + ln2 * ps[2]


# --------------------------------- main -------------------------------------
if __name__ == "__main__":
    B, S, H, NH = 2, 8, 32, 4  # batch, seq, hidden_size, num_heads

    key = jax.random.PRNGKey(0)
    kx, kp = jax.random.split(key)
    x = jax.random.normal(kx, (B, S, H), jnp.float32)
    params = init_params(kp, H)

    ref = ref_forward(x, params, NH)

    # f32 MXU path — strict check against the pure-JAX reference.
    out_f32 = jax.block_until_ready(
        transformer_encoder(x, params, NH, compute_dtype=jnp.float32))
    assert out_f32.shape == (B, S, H)
    err_f32 = float(jnp.max(jnp.abs(out_f32 - ref)))
    assert err_f32 < 1e-4, f"f32 mismatch vs reference: {err_f32}"

    # bf16 matmul-operand path (f32 accumulation) — relaxed tolerance.
    out_bf16 = jax.block_until_ready(
        transformer_encoder(x, params, NH, compute_dtype=jnp.bfloat16))
    err_bf16 = float(jnp.max(jnp.abs(out_bf16 - ref)))
    assert err_bf16 < 5e-2, f"bf16 mismatch vs reference: {err_bf16}"

    print("KERNEL_OK")
</pallas_src>

<mosaic_0001>
module attributes {stable_mosaic.version = 11 : i64} {
  func.func @encoder_kernel(%arg0: i32, %arg1: memref<3xf32, #tpu.memory_space<smem>>, %arg2: memref<2x8x32xf32, #tpu.memory_space<vmem>>, %arg3: memref<32x256xf32, #tpu.memory_space<vmem>>, %arg4: memref<1x256xf32, #tpu.memory_space<vmem>>, %arg5: memref<32x32xf32, #tpu.memory_space<vmem>>, %arg6: memref<1x32xf32, #tpu.memory_space<vmem>>, %arg7: memref<1x32xf32, #tpu.memory_space<vmem>>, %arg8: memref<1x32xf32, #tpu.memory_space<vmem>>, %arg9: memref<32x128xf32, #tpu.memory_space<vmem>>, %arg10: memref<1x128xf32, #tpu.memory_space<vmem>>, %arg11: memref<1x128xf32, #tpu.memory_space<vmem>>, %arg12: memref<1x128xf32, #tpu.memory_space<vmem>>, %arg13: memref<128x32xf32, #tpu.memory_space<vmem>>, %arg14: memref<1x32xf32, #tpu.memory_space<vmem>>, %arg15: memref<1x32xf32, #tpu.memory_space<vmem>>, %arg16: memref<1x32xf32, #tpu.memory_space<vmem>>, %arg17: memref<1x128xf32, #tpu.memory_space<vmem>>, %arg18: memref<1x128xf32, #tpu.memory_space<vmem>>, %arg19: memref<128x32xf32, #tpu.memory_space<vmem>>, %arg20: memref<1x32xf32, #tpu.memory_space<vmem>>, %arg21: memref<1x32xf32, #tpu.memory_space<vmem>>, %arg22: memref<1x32xf32, #tpu.memory_space<vmem>>, %arg23: memref<1x32xf32, #tpu.memory_space<vmem>>, %arg24: memref<1x32xf32, #tpu.memory_space<vmem>>, %arg25: memref<2x8x32xf32, #tpu.memory_space<vmem>>) attributes {dimension_semantics = [#tpu.dimension_semantics<parallel>], iteration_bounds = array<i64: 1>, scalar_prefetch = 0 : i64, scratch_operands = 0 : i64, tpu.core_type = #tpu.core_type<tc>, window_params = [{transform_indices = @transform_0, window_bounds = array<i64: 3>}, {transform_indices = @transform_1, window_bounds = array<i64: 2, 8, 32>}, {pipeline_mode = #tpu.pipeline_mode<synchronous>, transform_indices = @transform_2, window_bounds = array<i64: 32, 256>}, {pipeline_mode = #tpu.pipeline_mode<synchronous>, transform_indices = @transform_3, window_bounds = array<i64: 1, 256>}, {pipeline_mode = #tpu.pipeline_mode<synchronous>, transform_indices = @transform_4, window_bounds = array<i64: 32, 32>}, {pipeline_mode = #tpu.pipeline_mode<synchronous>, transform_indices = @transform_5, window_bounds = array<i64: 1, 32>}, {pipeline_mode = #tpu.pipeline_mode<synchronous>, transform_indices = @transform_6, window_bounds = array<i64: 1, 32>}, {pipeline_mode = #tpu.pipeline_mode<synchronous>, transform_indices = @transform_7, window_bounds = array<i64: 1, 32>}, {pipeline_mode = #tpu.pipeline_mode<synchronous>, transform_indices = @transform_8, window_bounds = array<i64: 32, 128>}, {pipeline_mode = #tpu.pipeline_mode<synchronous>, transform_indices = @transform_9, window_bounds = array<i64: 1, 128>}, {pipeline_mode = #tpu.pipeline_mode<synchronous>, transform_indices = @transform_10, window_bounds = array<i64: 1, 128>}, {pipeline_mode = #tpu.pipeline_mode<synchronous>, transform_indices = @transform_11, window_bounds = array<i64: 1, 128>}, {pipeline_mode = #tpu.pipeline_mode<synchronous>, transform_indices = @transform_12, window_bounds = array<i64: 128, 32>}, {pipeline_mode = #tpu.pipeline_mode<synchronous>, transform_indices = @transform_13, window_bounds = array<i64: 1, 32>}, {pipeline_mode = #tpu.pipeline_mode<synchronous>, transform_indices = @transform_14, window_bounds = array<i64: 1, 32>}, {pipeline_mode = #tpu.pipeline_mode<synchronous>, transform_indices = @transform_15, window_bounds = array<i64: 1, 32>}, {pipeline_mode = #tpu.pipeline_mode<synchronous>, transform_indices = @transform_16, window_bounds = array<i64: 1, 128>}, {pipeline_mode = #tpu.pipeline_mode<synchronous>, transform_indices = @transform_17, window_bounds = array<i64: 1, 128>}, {pipeline_mode = #tpu.pipeline_mode<synchronous>, transform_indices = @transform_18, window_bounds = array<i64: 128, 32>}, {pipeline_mode = #tpu.pipeline_mode<synchronous>, transform_indices = @transform_19, window_bounds = array<i64: 1, 32>}, {pipeline_mode = #tpu.pipeline_mode<synchronous>, transform_indices = @transform_20, window_bounds = array<i64: 1, 32>}, {pipeline_mode = #tpu.pipeline_mode<synchronous>, transform_indices = @transform_21, window_bounds = array<i64: 1, 32>}, {pipeline_mode = #tpu.pipeline_mode<synchronous>, transform_indices = @transform_22, window_bounds = array<i64: 1, 32>}, {pipeline_mode = #tpu.pipeline_mode<synchronous>, transform_indices = @transform_23, window_bounds = array<i64: 1, 32>}, {transform_indices = @transform_24, window_bounds = array<i64: 2, 8, 32>}]} {
    %c0 = arith.constant 0 : index
    %c0_0 = arith.constant 0 : index
    %c0_1 = arith.constant 0 : index
    %0 = vector.load %arg2[%c0, %c0_0, %c0_1] : memref<2x8x32xf32, #tpu.memory_space<vmem>>, vector<2x8x32xf32>
    %1 = vector.shape_cast %0 : vector<2x8x32xf32> to vector<16x32xf32>
    %c0_2 = arith.constant 0 : index
    %c0_3 = arith.constant 0 : index
    %2 = vector.load %arg3[%c0_2, %c0_3] : memref<32x256xf32, #tpu.memory_space<vmem>>, vector<32x256xf32>
    %cst = arith.constant dense<0.000000e+00> : vector<16x256xf32>
    %3 = tpu.matmul %1, %2, %cst {dimension_numbers = #tpu.dot_dimension_numbers<[1], [0], [0], [1], [0, 0, 1, 1], [], []>} : vector<16x32xf32>, vector<32x256xf32>, vector<16x256xf32> -> vector<16x256xf32>
    %c0_4 = arith.constant 0 : index
    %c0_5 = arith.constant 0 : index
    %4 = vector.load %arg4[%c0_4, %c0_5] : memref<1x256xf32, #tpu.memory_space<vmem>>, vector<1x256xf32>
    %5 = vector.broadcast %4 : vector<1x256xf32> to vector<16x256xf32>
    %6 = arith.addf %3, %5 : vector<16x256xf32>
    %7 = vector.extract_strided_slice %6 {offsets = [0, 0], sizes = [16, 32], strides = [1, 1]} : vector<16x256xf32> to vector<16x32xf32>
    %8 = vector.shape_cast %7 : vector<16x32xf32> to vector<2x8x32xf32>
    %9 = vector.extract_strided_slice %6 {offsets = [0, 32], sizes = [16, 32], strides = [1, 1]} : vector<16x256xf32> to vector<16x32xf32>
    %10 = vector.shape_cast %9 : vector<16x32xf32> to vector<2x8x32xf32>
    %11 = vector.extract_strided_slice %6 {offsets = [0, 64], sizes = [16, 32], strides = [1, 1]} : vector<16x256xf32> to vector<16x32xf32>
    %12 = vector.shape_cast %11 : vector<16x32xf32> to vector<2x8x32xf32>
    %13 = vector.extract_strided_slice %6 {offsets = [0, 96], sizes = [16, 128], strides = [1, 1]} : vector<16x256xf32> to vector<16x128xf32>
    %14 = vector.extract_strided_slice %6 {offsets = [0, 224], sizes = [16, 32], strides = [1, 1]} : vector<16x256xf32> to vector<16x32xf32>
    %c0_6 = arith.constant 0 : index
    %c0_7 = arith.constant 0 : index
    %15 = vector.load %arg5[%c0_6, %c0_7] : memref<32x32xf32, #tpu.memory_space<vmem>>, vector<32x32xf32>
    %cst_8 = arith.constant 0.000000e+00 : f32
    %16 = vector.broadcast %cst_8 : f32 to vector<16x32xf32>
    %17 = vector.extract_strided_slice %8 {offsets = [0, 0, 0], sizes = [2, 8, 8], strides = [1, 1, 1]} : vector<2x8x32xf32> to vector<2x8x8xf32>
    %18 = vector.extract_strided_slice %10 {offsets = [0, 0, 0], sizes = [2, 8, 8], strides = [1, 1, 1]} : vector<2x8x32xf32> to vector<2x8x8xf32>
    %19 = vector.extract_strided_slice %12 {offsets = [0, 0, 0], sizes = [2, 8, 8], strides = [1, 1, 1]} : vector<2x8x32xf32> to vector<2x8x8xf32>
    "tpu.trace_start"() <{level = 10 : i32, message = "bqd,bkd->bqk"}> : () -> ()
    %cst_9 = arith.constant dense<0.000000e+00> : vector<2x8x8xf32>
    %20 = tpu.matmul %17, %18, %cst_9 {dimension_numbers = #tpu.dot_dimension_numbers<[2], [2], [1], [1], [0, 0, 0, 1, 1, 1], [0], [0]>} : vector<2x8x8xf32>, vector<2x8x8xf32>, vector<2x8x8xf32> -> vector<2x8x8xf32>
    "tpu.trace_stop"() : () -> ()
    %cst_10 = arith.constant dense<0xFF800000> : vector<2x8xf32>
    %21 = vector.multi_reduction <maximumf>, %20, %cst_10 [2] : vector<2x8x8xf32> to vector<2x8xf32>
    %22 = vector.shape_cast %21 : vector<2x8xf32> to vector<2x8x1xf32>
    %23 = vector.broadcast %22 : vector<2x8x1xf32> to vector<2x8x8xf32>
    %24 = arith.subf %20, %23 : vector<2x8x8xf32>
    %25 = math.exp %24 : vector<2x8x8xf32>
    %cst_11 = arith.constant dense<0.000000e+00> : vector<2x8xf32>
    %26 = vector.multi_reduction <add>, %25, %cst_11 [2] : vector<2x8x8xf32> to vector<2x8xf32>
    %27 = vector.shape_cast %26 : vector<2x8xf32> to vector<2x8x1xf32>
    %28 = vector.broadcast %27 : vector<2x8x1xf32> to vector<2x8x8xf32>
    %29 = arith.divf %25, %28 : vector<2x8x8xf32>
    "tpu.trace_start"() <{level = 10 : i32, message = "bqk,bkd->bqd"}> : () -> ()
    %cst_12 = arith.constant dense<0.000000e+00> : vector<2x8x8xf32>
    %30 = tpu.matmul %29, %19, %cst_12 {dimension_numbers = #tpu.dot_dimension_numbers<[2], [1], [1], [2], [0, 0, 0, 1, 1, 2], [0], [0]>} : vector<2x8x8xf32>, vector<2x8x8xf32>, vector<2x8x8xf32> -> vector<2x8x8xf32>
    "tpu.trace_stop"() : () -> ()
    %31 = vector.shape_cast %30 : vector<2x8x8xf32> to vector<16x8xf32>
    %32 = vector.extract_strided_slice %15 {offsets = [0, 0], sizes = [8, 32], strides = [1, 1]} : vector<32x32xf32> to vector<8x32xf32>
    %cst_13 = arith.constant dense<0.000000e+00> : vector<16x32xf32>
    %33 = tpu.matmul %31, %32, %cst_13 {dimension_numbers = #tpu.dot_dimension_numbers<[1], [0], [0], [1], [0, 0, 1, 1], [], []>} : vector<16x8xf32>, vector<8x32xf32>, vector<16x32xf32> -> vector<16x32xf32>
    %34 = arith.addf %16, %33 : vector<16x32xf32>
    %35 = vector.extract_strided_slice %8 {offsets = [0, 0, 8], sizes = [2, 8, 8], strides = [1, 1, 1]} : vector<2x8x32xf32> to vector<2x8x8xf32>
    %36 = vector.extract_strided_slice %10 {offsets = [0, 0, 8], sizes = [2, 8, 8], strides = [1, 1, 1]} : vector<2x8x32xf32> to vector<2x8x8xf32>
    %37 = vector.extract_strided_slice %12 {offsets = [0, 0, 8], sizes = [2, 8, 8], strides = [1, 1, 1]} : vector<2x8x32xf32> to vector<2x8x8xf32>
    "tpu.trace_start"() <{level = 10 : i32, message = "bqd,bkd->bqk"}> : () -> ()
    %cst_14 = arith.constant dense<0.000000e+00> : vector<2x8x8xf32>
    %38 = tpu.matmul %35, %36, %cst_14 {dimension_numbers = #tpu.dot_dimension_numbers<[2], [2], [1], [1], [0, 0, 0, 1, 1, 1], [0], [0]>} : vector<2x8x8xf32>, vector<2x8x8xf32>, vector<2x8x8xf32> -> vector<2x8x8xf32>
    "tpu.trace_stop"() : () -> ()
    %cst_15 = arith.constant dense<0xFF800000> : vector<2x8xf32>
    %39 = vector.multi_reduction <maximumf>, %38, %cst_15 [2] : vector<2x8x8xf32> to vector<2x8xf32>
    %40 = vector.shape_cast %39 : vector<2x8xf32> to vector<2x8x1xf32>
    %41 = vector.broadcast %40 : vector<2x8x1xf32> to vector<2x8x8xf32>
    %42 = arith.subf %38, %41 : vector<2x8x8xf32>
    %43 = math.exp %42 : vector<2x8x8xf32>
    %cst_16 = arith.constant dense<0.000000e+00> : vector<2x8xf32>
    %44 = vector.multi_reduction <add>, %43, %cst_16 [2] : vector<2x8x8xf32> to vector<2x8xf32>
    %45 = vector.shape_cast %44 : vector<2x8xf32> to vector<2x8x1xf32>
    %46 = vector.broadcast %45 : vector<2x8x1xf32> to vector<2x8x8xf32>
    %47 = arith.divf %43, %46 : vector<2x8x8xf32>
    "tpu.trace_start"() <{level = 10 : i32, message = "bqk,bkd->bqd"}> : () -> ()
    %cst_17 = arith.constant dense<0.000000e+00> : vector<2x8x8xf32>
    %48 = tpu.matmul %47, %37, %cst_17 {dimension_numbers = #tpu.dot_dimension_numbers<[2], [1], [1], [2], [0, 0, 0, 1, 1, 2], [0], [0]>} : vector<2x8x8xf32>, vector<2x8x8xf32>, vector<2x8x8xf32> -> vector<2x8x8xf32>
    "tpu.trace_stop"() : () -> ()
    %49 = vector.shape_cast %48 : vector<2x8x8xf32> to vector<16x8xf32>
    %50 = vector.extract_strided_slice %15 {offsets = [8, 0], sizes = [8, 32], strides = [1, 1]} : vector<32x32xf32> to vector<8x32xf32>
    %cst_18 = arith.constant dense<0.000000e+00> : vector<16x32xf32>
    %51 = tpu.matmul %49, %50, %cst_18 {dimension_numbers = #tpu.dot_dimension_numbers<[1], [0], [0], [1], [0, 0, 1, 1], [], []>} : vector<16x8xf32>, vector<8x32xf32>, vector<16x32xf32> -> vector<16x32xf32>
    %52 = arith.addf %34, %51 : vector<16x32xf32>
    %53 = vector.extract_strided_slice %8 {offsets = [0, 0, 16], sizes = [2, 8, 8], strides = [1, 1, 1]} : vector<2x8x32xf32> to vector<2x8x8xf32>
    %54 = vector.extract_strided_slice %10 {offsets = [0, 0, 16], sizes = [2, 8, 8], strides = [1, 1, 1]} : vector<2x8x32xf32> to vector<2x8x8xf32>
    %55 = vector.extract_strided_slice %12 {offsets = [0, 0, 16], sizes = [2, 8, 8], strides = [1, 1, 1]} : vector<2x8x32xf32> to vector<2x8x8xf32>
    "tpu.trace_start"() <{level = 10 : i32, message = "bqd,bkd->bqk"}> : () -> ()
    %cst_19 = arith.constant dense<0.000000e+00> : vector<2x8x8xf32>
    %56 = tpu.matmul %53, %54, %cst_19 {dimension_numbers = #tpu.dot_dimension_numbers<[2], [2], [1], [1], [0, 0, 0, 1, 1, 1], [0], [0]>} : vector<2x8x8xf32>, vector<2x8x8xf32>, vector<2x8x8xf32> -> vector<2x8x8xf32>
    "tpu.trace_stop"() : () -> ()
    %cst_20 = arith.constant dense<0xFF800000> : vector<2x8xf32>
    %57 = vector.multi_reduction <maximumf>, %56, %cst_20 [2] : vector<2x8x8xf32> to vector<2x8xf32>
    %58 = vector.shape_cast %57 : vector<2x8xf32> to vector<2x8x1xf32>
    %59 = vector.broadcast %58 : vector<2x8x1xf32> to vector<2x8x8xf32>
    %60 = arith.subf %56, %59 : vector<2x8x8xf32>
    %61 = math.exp %60 : vector<2x8x8xf32>
    %cst_21 = arith.constant dense<0.000000e+00> : vector<2x8xf32>
    %62 = vector.multi_reduction <add>, %61, %cst_21 [2] : vector<2x8x8xf32> to vector<2x8xf32>
    %63 = vector.shape_cast %62 : vector<2x8xf32> to vector<2x8x1xf32>
    %64 = vector.broadcast %63 : vector<2x8x1xf32> to vector<2x8x8xf32>
    %65 = arith.divf %61, %64 : vector<2x8x8xf32>
    "tpu.trace_start"() <{level = 10 : i32, message = "bqk,bkd->bqd"}> : () -> ()
    %cst_22 = arith.constant dense<0.000000e+00> : vector<2x8x8xf32>
    %66 = tpu.matmul %65, %55, %cst_22 {dimension_numbers = #tpu.dot_dimension_numbers<[2], [1], [1], [2], [0, 0, 0, 1, 1, 2], [0], [0]>} : vector<2x8x8xf32>, vector<2x8x8xf32>, vector<2x8x8xf32> -> vector<2x8x8xf32>
    "tpu.trace_stop"() : () -> ()
    %67 = vector.shape_cast %66 : vector<2x8x8xf32> to vector<16x8xf32>
    %68 = vector.extract_strided_slice %15 {offsets = [16, 0], sizes = [8, 32], strides = [1, 1]} : vector<32x32xf32> to vector<8x32xf32>
    %cst_23 = arith.constant dense<0.000000e+00> : vector<16x32xf32>
    %69 = tpu.matmul %67, %68, %cst_23 {dimension_numbers = #tpu.dot_dimension_numbers<[1], [0], [0], [1], [0, 0, 1, 1], [], []>} : vector<16x8xf32>, vector<8x32xf32>, vector<16x32xf32> -> vector<16x32xf32>
    %70 = arith.addf %52, %69 : vector<16x32xf32>
    %71 = vector.extract_strided_slice %8 {offsets = [0, 0, 24], sizes = [2, 8, 8], strides = [1, 1, 1]} : vector<2x8x32xf32> to vector<2x8x8xf32>
    %72 = vector.extract_strided_slice %10 {offsets = [0, 0, 24], sizes = [2, 8, 8], strides = [1, 1, 1]} : vector<2x8x32xf32> to vector<2x8x8xf32>
    %73 = vector.extract_strided_slice %12 {offsets = [0, 0, 24], sizes = [2, 8, 8], strides = [1, 1, 1]} : vector<2x8x32xf32> to vector<2x8x8xf32>
    "tpu.trace_start"() <{level = 10 : i32, message = "bqd,bkd->bqk"}> : () -> ()
    %cst_24 = arith.constant dense<0.000000e+00> : vector<2x8x8xf32>
    %74 = tpu.matmul %71, %72, %cst_24 {dimension_numbers = #tpu.dot_dimension_numbers<[2], [2], [1], [1], [0, 0, 0, 1, 1, 1], [0], [0]>} : vector<2x8x8xf32>, vector<2x8x8xf32>, vector<2x8x8xf32> -> vector<2x8x8xf32>
    "tpu.trace_stop"() : () -> ()
    %cst_25 = arith.constant dense<0xFF800000> : vector<2x8xf32>
    %75 = vector.multi_reduction <maximumf>, %74, %cst_25 [2] : vector<2x8x8xf32> to vector<2x8xf32>
    %76 = vector.shape_cast %75 : vector<2x8xf32> to vector<2x8x1xf32>
    %77 = vector.broadcast %76 : vector<2x8x1xf32> to vector<2x8x8xf32>
    %78 = arith.subf %74, %77 : vector<2x8x8xf32>
    %79 = math.exp %78 : vector<2x8x8xf32>
    %cst_26 = arith.constant dense<0.000000e+00> : vector<2x8xf32>
    %80 = vector.multi_reduction <add>, %79, %cst_26 [2] : vector<2x8x8xf32> to vector<2x8xf32>
    %81 = vector.shape_cast %80 : vector<2x8xf32> to vector<2x8x1xf32>
    %82 = vector.broadcast %81 : vector<2x8x1xf32> to vector<2x8x8xf32>
    %83 = arith.divf %79, %82 : vector<2x8x8xf32>
    "tpu.trace_start"() <{level = 10 : i32, message = "bqk,bkd->bqd"}> : () -> ()
    %cst_27 = arith.constant dense<0.000000e+00> : vector<2x8x8xf32>
    %84 = tpu.matmul %83, %73, %cst_27 {dimension_numbers = #tpu.dot_dimension_numbers<[2], [1], [1], [2], [0, 0, 0, 1, 1, 2], [0], [0]>} : vector<2x8x8xf32>, vector<2x8x8xf32>, vector<2x8x8xf32> -> vector<2x8x8xf32>
    "tpu.trace_stop"() : () -> ()
    %85 = vector.shape_cast %84 : vector<2x8x8xf32> to vector<16x8xf32>
    %86 = vector.extract_strided_slice %15 {offsets = [24, 0], sizes = [8, 32], strides = [1, 1]} : vector<32x32xf32> to vector<8x32xf32>
    %cst_28 = arith.constant dense<0.000000e+00> : vector<16x32xf32>
    %87 = tpu.matmul %85, %86, %cst_28 {dimension_numbers = #tpu.dot_dimension_numbers<[1], [0], [0], [1], [0, 0, 1, 1], [], []>} : vector<16x8xf32>, vector<8x32xf32>, vector<16x32xf32> -> vector<16x32xf32>
    %88 = arith.addf %70, %87 : vector<16x32xf32>
    %c0_29 = arith.constant 0 : index
    %c0_30 = arith.constant 0 : index
    %89 = vector.load %arg6[%c0_29, %c0_30] : memref<1x32xf32, #tpu.memory_space<vmem>>, vector<1x32xf32>
    %90 = vector.broadcast %89 : vector<1x32xf32> to vector<16x32xf32>
    %91 = arith.addf %88, %90 : vector<16x32xf32>
    %92 = arith.addf %91, %1 : vector<16x32xf32>
    %c0_31 = arith.constant 0 : index
    %c0_32 = arith.constant 0 : index
    %93 = vector.load %arg7[%c0_31, %c0_32] : memref<1x32xf32, #tpu.memory_space<vmem>>, vector<1x32xf32>
    %c0_33 = arith.constant 0 : index
    %c0_34 = arith.constant 0 : index
    %94 = vector.load %arg8[%c0_33, %c0_34] : memref<1x32xf32, #tpu.memory_space<vmem>>, vector<1x32xf32>
    %cst_35 = arith.constant dense<0.000000e+00> : vector<16xf32>
    %95 = vector.multi_reduction <add>, %92, %cst_35 [1] : vector<16x32xf32> to vector<16xf32>
    %96 = vector.shape_cast %95 : vector<16xf32> to vector<16x1xf32>
    %cst_36 = arith.constant 3.200000e+01 : f32
    %97 = vector.broadcast %cst_36 : f32 to vector<16x1xf32>
    %98 = arith.divf %96, %97 : vector<16x1xf32>
    %99 = vector.broadcast %98 : vector<16x1xf32> to vector<16x32xf32>
    %100 = arith.subf %92, %99 : vector<16x32xf32>
    %101 = arith.mulf %100, %100 : vector<16x32xf32>
    %cst_37 = arith.constant dense<0.000000e+00> : vector<16xf32>
    %102 = vector.multi_reduction <add>, %101, %cst_37 [1] : vector<16x32xf32> to vector<16xf32>
    %103 = vector.shape_cast %102 : vector<16xf32> to vector<16x1xf32>
    %cst_38 = arith.constant 3.200000e+01 : f32
    %104 = vector.broadcast %cst_38 : f32 to vector<16x1xf32>
    %105 = arith.divf %103, %104 : vector<16x1xf32>
    %106 = vector.broadcast %98 : vector<16x1xf32> to vector<16x32xf32>
    %107 = arith.subf %92, %106 : vector<16x32xf32>
    %cst_39 = arith.constant 9.99999974E-6 : f32
    %108 = vector.broadcast %cst_39 : f32 to vector<16x1xf32>
    %109 = arith.addf %105, %108 : vector<16x1xf32>
    %110 = math.rsqrt %109 : vector<16x1xf32>
    %111 = vector.broadcast %110 : vector<16x1xf32> to vector<16x32xf32>
    %112 = arith.mulf %107, %111 : vector<16x32xf32>
    %113 = vector.broadcast %93 : vector<1x32xf32> to vector<16x32xf32>
    %114 = arith.mulf %112, %113 : vector<16x32xf32>
    %115 = vector.broadcast %94 : vector<1x32xf32> to vector<16x32xf32>
    %116 = arith.addf %114, %115 : vector<16x32xf32>
    %c0_40 = arith.constant 0 : index
    %c0_41 = arith.constant 0 : index
    %117 = vector.load %arg9[%c0_40, %c0_41] : memref<32x128xf32, #tpu.memory_space<vmem>>, vector<32x128xf32>
    %cst_42 = arith.constant dense<0.000000e+00> : vector<16x128xf32>
    %118 = tpu.matmul %116, %117, %cst_42 {dimension_numbers = #tpu.dot_dimension_numbers<[1], [0], [0], [1], [0, 0, 1, 1], [], []>} : vector<16x32xf32>, vector<32x128xf32>, vector<16x128xf32> -> vector<16x128xf32>
    %c0_43 = arith.constant 0 : index
    %c0_44 = arith.constant 0 : index
    %119 = vector.load %arg10[%c0_43, %c0_44] : memref<1x128xf32, #tpu.memory_space<vmem>>, vector<1x128xf32>
    %120 = vector.broadcast %119 : vector<1x128xf32> to vector<16x128xf32>
    %121 = arith.addf %118, %120 : vector<16x128xf32>
    %c0_45 = arith.constant 0 : index
    %c0_46 = arith.constant 0 : index
    %122 = vector.load %arg11[%c0_45, %c0_46] : memref<1x128xf32, #tpu.memory_space<vmem>>, vector<1x128xf32>
    %c0_47 = arith.constant 0 : index
    %c0_48 = arith.constant 0 : index
    %123 = vector.load %arg12[%c0_47, %c0_48] : memref<1x128xf32, #tpu.memory_space<vmem>>, vector<1x128xf32>
    %cst_49 = arith.constant dense<0.000000e+00> : vector<16xf32>
    %124 = vector.multi_reduction <add>, %121, %cst_49 [1] : vector<16x128xf32> to vector<16xf32>
    %125 = vector.shape_cast %124 : vector<16xf32> to vector<16x1xf32>
    %cst_50 = arith.constant 1.280000e+02 : f32
    %126 = vector.broadcast %cst_50 : f32 to vector<16x1xf32>
    %127 = arith.divf %125, %126 : vector<16x1xf32>
    %128 = vector.broadcast %127 : vector<16x1xf32> to vector<16x128xf32>
    %129 = arith.subf %121, %128 : vector<16x128xf32>
    %130 = arith.mulf %129, %129 : vector<16x128xf32>
    %cst_51 = arith.constant dense<0.000000e+00> : vector<16xf32>
    %131 = vector.multi_reduction <add>, %130, %cst_51 [1] : vector<16x128xf32> to vector<16xf32>
    %132 = vector.shape_cast %131 : vector<16xf32> to vector<16x1xf32>
    %cst_52 = arith.constant 1.280000e+02 : f32
    %133 = vector.broadcast %cst_52 : f32 to vector<16x1xf32>
    %134 = arith.divf %132, %133 : vector<16x1xf32>
    %135 = vector.broadcast %127 : vector<16x1xf32> to vector<16x128xf32>
    %136 = arith.subf %121, %135 : vector<16x128xf32>
    %cst_53 = arith.constant 9.99999974E-6 : f32
    %137 = vector.broadcast %cst_53 : f32 to vector<16x1xf32>
    %138 = arith.addf %134, %137 : vector<16x1xf32>
    %139 = math.rsqrt %138 : vector<16x1xf32>
    %140 = vector.broadcast %139 : vector<16x1xf32> to vector<16x128xf32>
    %141 = arith.mulf %136, %140 : vector<16x128xf32>
    %142 = vector.broadcast %122 : vector<1x128xf32> to vector<16x128xf32>
    %143 = arith.mulf %141, %142 : vector<16x128xf32>
    %144 = vector.broadcast %123 : vector<1x128xf32> to vector<16x128xf32>
    %145 = arith.addf %143, %144 : vector<16x128xf32>
    %cst_54 = arith.constant 0.000000e+00 : f32
    %146 = vector.broadcast %cst_54 : f32 to vector<16x128xf32>
    %147 = arith.maximumf %145, %146 : vector<16x128xf32>
    %148 = vector.broadcast %cst_54 : f32 to vector<16x128xf32>
    %149 = arith.subf %145, %148 : vector<16x128xf32>
    %150 = arith.cmpf one, %149, %149 : vector<16x128xf32>
    %151 = vector.broadcast %cst_54 : f32 to vector<16x128xf32>
    %152 = arith.addf %145, %151 : vector<16x128xf32>
    %153 = math.absf %149 : vector<16x128xf32>
    %cst_55 = arith.constant 0.000000e+00 : f32
    %154 = vector.broadcast %cst_55 : f32 to vector<16x128xf32>
    %155 = arith.subf %154, %153 : vector<16x128xf32>
    %156 = math.exp %155 : vector<16x128xf32>
    %157 = math.log1p %156 : vector<16x128xf32>
    %158 = arith.addf %147, %157 : vector<16x128xf32>
    %159 = arith.select %150, %152, %158 : vector<16x128xi1>, vector<16x128xf32>
    %160 = math.tanh %159 : vector<16x128xf32>
    %161 = arith.mulf %145, %160 : vector<16x128xf32>
    %c0_56 = arith.constant 0 : index
    %c0_57 = arith.constant 0 : index
    %162 = vector.load %arg13[%c0_56, %c0_57] : memref<128x32xf32, #tpu.memory_space<vmem>>, vector<128x32xf32>
    %cst_58 = arith.constant dense<0.000000e+00> : vector<16x32xf32>
    %163 = tpu.matmul %161, %162, %cst_58 {dimension_numbers = #tpu.dot_dimension_numbers<[1], [0], [0], [1], [0, 0, 1, 1], [], []>} : vector<16x128xf32>, vector<128x32xf32>, vector<16x32xf32> -> vector<16x32xf32>
    %c0_59 = arith.constant 0 : index
    %c0_60 = arith.constant 0 : index
    %164 = vector.load %arg14[%c0_59, %c0_60] : memref<1x32xf32, #tpu.memory_space<vmem>>, vector<1x32xf32>
    %165 = vector.broadcast %164 : vector<1x32xf32> to vector<16x32xf32>
    %166 = arith.addf %163, %165 : vector<16x32xf32>
    %cst_61 = arith.constant 0.000000e+00 : f32
    %167 = vector.broadcast %cst_61 : f32 to vector<16x32xf32>
    %168 = arith.maximumf %166, %167 : vector<16x32xf32>
    %169 = vector.broadcast %cst_61 : f32 to vector<16x32xf32>
    %170 = arith.subf %166, %169 : vector<16x32xf32>
    %171 = arith.cmpf one, %170, %170 : vector<16x32xf32>
    %172 = vector.broadcast %cst_61 : f32 to vector<16x32xf32>
    %173 = arith.addf %166, %172 : vector<16x32xf32>
    %174 = math.absf %170 : vector<16x32xf32>
    %cst_62 = arith.constant 0.000000e+00 : f32
    %175 = vector.broadcast %cst_62 : f32 to vector<16x32xf32>
    %176 = arith.subf %175, %174 : vector<16x32xf32>
    %177 = math.exp %176 : vector<16x32xf32>
    %178 = math.log1p %177 : vector<16x32xf32>
    %179 = arith.addf %168, %178 : vector<16x32xf32>
    %180 = arith.select %171, %173, %179 : vector<16x32xi1>, vector<16x32xf32>
    %181 = math.tanh %180 : vector<16x32xf32>
    %182 = arith.mulf %166, %181 : vector<16x32xf32>
    %183 = arith.addf %182, %116 : vector<16x32xf32>
    %c0_63 = arith.constant 0 : index
    %c0_64 = arith.constant 0 : index
    %184 = vector.load %arg15[%c0_63, %c0_64] : memref<1x32xf32, #tpu.memory_space<vmem>>, vector<1x32xf32>
    %c0_65 = arith.constant 0 : index
    %c0_66 = arith.constant 0 : index
    %185 = vector.load %arg16[%c0_65, %c0_66] : memref<1x32xf32, #tpu.memory_space<vmem>>, vector<1x32xf32>
    %cst_67 = arith.constant dense<0.000000e+00> : vector<16xf32>
    %186 = vector.multi_reduction <add>, %183, %cst_67 [1] : vector<16x32xf32> to vector<16xf32>
    %187 = vector.shape_cast %186 : vector<16xf32> to vector<16x1xf32>
    %cst_68 = arith.constant 3.200000e+01 : f32
    %188 = vector.broadcast %cst_68 : f32 to vector<16x1xf32>
    %189 = arith.divf %187, %188 : vector<16x1xf32>
    %190 = vector.broadcast %189 : vector<16x1xf32> to vector<16x32xf32>
    %191 = arith.subf %183, %190 : vector<16x32xf32>
    %192 = arith.mulf %191, %191 : vector<16x32xf32>
    %cst_69 = arith.constant dense<0.000000e+00> : vector<16xf32>
    %193 = vector.multi_reduction <add>, %192, %cst_69 [1] : vector<16x32xf32> to vector<16xf32>
    %194 = vector.shape_cast %193 : vector<16xf32> to vector<16x1xf32>
    %cst_70 = arith.constant 3.200000e+01 : f32
    %195 = vector.broadcast %cst_70 : f32 to vector<16x1xf32>
    %196 = arith.divf %194, %195 : vector<16x1xf32>
    %197 = vector.broadcast %189 : vector<16x1xf32> to vector<16x32xf32>
    %198 = arith.subf %183, %197 : vector<16x32xf32>
    %cst_71 = arith.constant 9.99999974E-6 : f32
    %199 = vector.broadcast %cst_71 : f32 to vector<16x1xf32>
    %200 = arith.addf %196, %199 : vector<16x1xf32>
    %201 = math.rsqrt %200 : vector<16x1xf32>
    %202 = vector.broadcast %201 : vector<16x1xf32> to vector<16x32xf32>
    %203 = arith.mulf %198, %202 : vector<16x32xf32>
    %204 = vector.broadcast %184 : vector<1x32xf32> to vector<16x32xf32>
    %205 = arith.mulf %203, %204 : vector<16x32xf32>
    %206 = vector.broadcast %185 : vector<1x32xf32> to vector<16x32xf32>
    %207 = arith.addf %205, %206 : vector<16x32xf32>
    %c0_72 = arith.constant 0 : index
    %c0_73 = arith.constant 0 : index
    %208 = vector.load %arg17[%c0_72, %c0_73] : memref<1x128xf32, #tpu.memory_space<vmem>>, vector<1x128xf32>
    %c0_74 = arith.constant 0 : index
    %c0_75 = arith.constant 0 : index
    %209 = vector.load %arg18[%c0_74, %c0_75] : memref<1x128xf32, #tpu.memory_space<vmem>>, vector<1x128xf32>
    %cst_76 = arith.constant dense<0.000000e+00> : vector<16xf32>
    %210 = vector.multi_reduction <add>, %13, %cst_76 [1] : vector<16x128xf32> to vector<16xf32>
    %211 = vector.shape_cast %210 : vector<16xf32> to vector<16x1xf32>
    %cst_77 = arith.constant 1.280000e+02 : f32
    %212 = vector.broadcast %cst_77 : f32 to vector<16x1xf32>
    %213 = arith.divf %211, %212 : vector<16x1xf32>
    %214 = vector.broadcast %213 : vector<16x1xf32> to vector<16x128xf32>
    %215 = arith.subf %13, %214 : vector<16x128xf32>
    %216 = arith.mulf %215, %215 : vector<16x128xf32>
    %cst_78 = arith.constant dense<0.000000e+00> : vector<16xf32>
    %217 = vector.multi_reduction <add>, %216, %cst_78 [1] : vector<16x128xf32> to vector<16xf32>
    %218 = vector.shape_cast %217 : vector<16xf32> to vector<16x1xf32>
    %cst_79 = arith.constant 1.280000e+02 : f32
    %219 = vector.broadcast %cst_79 : f32 to vector<16x1xf32>
    %220 = arith.divf %218, %219 : vector<16x1xf32>
    %221 = vector.broadcast %213 : vector<16x1xf32> to vector<16x128xf32>
    %222 = arith.subf %13, %221 : vector<16x128xf32>
    %cst_80 = arith.constant 9.99999974E-6 : f32
    %223 = vector.broadcast %cst_80 : f32 to vector<16x1xf32>
    %224 = arith.addf %220, %223 : vector<16x1xf32>
    %225 = math.rsqrt %224 : vector<16x1xf32>
    %226 = vector.broadcast %225 : vector<16x1xf32> to vector<16x128xf32>
    %227 = arith.mulf %222, %226 : vector<16x128xf32>
    %228 = vector.broadcast %208 : vector<1x128xf32> to vector<16x128xf32>
    %229 = arith.mulf %227, %228 : vector<16x128xf32>
    %230 = vector.broadcast %209 : vector<1x128xf32> to vector<16x128xf32>
    %231 = arith.addf %229, %230 : vector<16x128xf32>
    %cst_81 = arith.constant 0.000000e+00 : f32
    %232 = vector.broadcast %cst_81 : f32 to vector<16x128xf32>
    %233 = arith.maximumf %231, %232 : vector<16x128xf32>
    %234 = vector.broadcast %cst_81 : f32 to vector<16x128xf32>
    %235 = arith.subf %231, %234 : vector<16x128xf32>
    %236 = arith.cmpf one, %235, %235 : vector<16x128xf32>
    %237 = vector.broadcast %cst_81 : f32 to vector<16x128xf32>
    %238 = arith.addf %231, %237 : vector<16x128xf32>
    %239 = math.absf %235 : vector<16x128xf32>
    %cst_82 = arith.constant 0.000000e+00 : f32
    %240 = vector.broadcast %cst_82 : f32 to vector<16x128xf32>
    %241 = arith.subf %240, %239 : vector<16x128xf32>
    %242 = math.exp %241 : vector<16x128xf32>
    %243 = math.log1p %242 : vector<16x128xf32>
    %244 = arith.addf %233, %243 : vector<16x128xf32>
    %245 = arith.select %236, %238, %244 : vector<16x128xi1>, vector<16x128xf32>
    %246 = math.tanh %245 : vector<16x128xf32>
    %247 = arith.mulf %231, %246 : vector<16x128xf32>
    %c0_83 = arith.constant 0 : index
    %c0_84 = arith.constant 0 : index
    %248 = vector.load %arg19[%c0_83, %c0_84] : memref<128x32xf32, #tpu.memory_space<vmem>>, vector<128x32xf32>
    %cst_85 = arith.constant dense<0.000000e+00> : vector<16x32xf32>
    %249 = tpu.matmul %247, %248, %cst_85 {dimension_numbers = #tpu.dot_dimension_numbers<[1], [0], [0], [1], [0, 0, 1, 1], [], []>} : vector<16x128xf32>, vector<128x32xf32>, vector<16x32xf32> -> vector<16x32xf32>
    %c0_86 = arith.constant 0 : index
    %c0_87 = arith.constant 0 : index
    %250 = vector.load %arg20[%c0_86, %c0_87] : memref<1x32xf32, #tpu.memory_space<vmem>>, vector<1x32xf32>
    %251 = vector.broadcast %250 : vector<1x32xf32> to vector<16x32xf32>
    %252 = arith.addf %249, %251 : vector<16x32xf32>
    %cst_88 = arith.constant 0.000000e+00 : f32
    %253 = vector.broadcast %cst_88 : f32 to vector<16x32xf32>
    %254 = arith.maximumf %252, %253 : vector<16x32xf32>
    %255 = vector.broadcast %cst_88 : f32 to vector<16x32xf32>
    %256 = arith.subf %252, %255 : vector<16x32xf32>
    %257 = arith.cmpf one, %256, %256 : vector<16x32xf32>
    %258 = vector.broadcast %cst_88 : f32 to vector<16x32xf32>
    %259 = arith.addf %252, %258 : vector<16x32xf32>
    %260 = math.absf %256 : vector<16x32xf32>
    %cst_89 = arith.constant 0.000000e+00 : f32
    %261 = vector.broadcast %cst_89 : f32 to vector<16x32xf32>
    %262 = arith.subf %261, %260 : vector<16x32xf32>
    %263 = math.exp %262 : vector<16x32xf32>
    %264 = math.log1p %263 : vector<16x32xf32>
    %265 = arith.addf %254, %264 : vector<16x32xf32>
    %266 = arith.select %257, %259, %265 : vector<16x32xi1>, vector<16x32xf32>
    %267 = math.tanh %266 : vector<16x32xf32>
    %268 = arith.mulf %252, %267 : vector<16x32xf32>
    %269 = arith.addf %268, %1 : vector<16x32xf32>
    %c0_90 = arith.constant 0 : index
    %c0_91 = arith.constant 0 : index
    %270 = vector.load %arg21[%c0_90, %c0_91] : memref<1x32xf32, #tpu.memory_space<vmem>>, vector<1x32xf32>
    %c0_92 = arith.constant 0 : index
    %c0_93 = arith.constant 0 : index
    %271 = vector.load %arg22[%c0_92, %c0_93] : memref<1x32xf32, #tpu.memory_space<vmem>>, vector<1x32xf32>
    %cst_94 = arith.constant dense<0.000000e+00> : vector<16xf32>
    %272 = vector.multi_reduction <add>, %269, %cst_94 [1] : vector<16x32xf32> to vector<16xf32>
    %273 = vector.shape_cast %272 : vector<16xf32> to vector<16x1xf32>
    %cst_95 = arith.constant 3.200000e+01 : f32
    %274 = vector.broadcast %cst_95 : f32 to vector<16x1xf32>
    %275 = arith.divf %273, %274 : vector<16x1xf32>
    %276 = vector.broadcast %275 : vector<16x1xf32> to vector<16x32xf32>
    %277 = arith.subf %269, %276 : vector<16x32xf32>
    %278 = arith.mulf %277, %277 : vector<16x32xf32>
    %cst_96 = arith.constant dense<0.000000e+00> : vector<16xf32>
    %279 = vector.multi_reduction <add>, %278, %cst_96 [1] : vector<16x32xf32> to vector<16xf32>
    %280 = vector.shape_cast %279 : vector<16xf32> to vector<16x1xf32>
    %cst_97 = arith.constant 3.200000e+01 : f32
    %281 = vector.broadcast %cst_97 : f32 to vector<16x1xf32>
    %282 = arith.divf %280, %281 : vector<16x1xf32>
    %283 = vector.broadcast %275 : vector<16x1xf32> to vector<16x32xf32>
    %284 = arith.subf %269, %283 : vector<16x32xf32>
    %cst_98 = arith.constant 9.99999974E-6 : f32
    %285 = vector.broadcast %cst_98 : f32 to vector<16x1xf32>
    %286 = arith.addf %282, %285 : vector<16x1xf32>
    %287 = math.rsqrt %286 : vector<16x1xf32>
    %288 = vector.broadcast %287 : vector<16x1xf32> to vector<16x32xf32>
    %289 = arith.mulf %284, %288 : vector<16x32xf32>
    %290 = vector.broadcast %270 : vector<1x32xf32> to vector<16x32xf32>
    %291 = arith.mulf %289, %290 : vector<16x32xf32>
    %292 = vector.broadcast %271 : vector<1x32xf32> to vector<16x32xf32>
    %293 = arith.addf %291, %292 : vector<16x32xf32>
    %cst_99 = arith.constant 0.000000e+00 : f32
    %294 = vector.broadcast %cst_99 : f32 to vector<16x32xf32>
    %295 = arith.maximumf %14, %294 : vector<16x32xf32>
    %296 = vector.broadcast %cst_99 : f32 to vector<16x32xf32>
    %297 = arith.subf %14, %296 : vector<16x32xf32>
    %298 = arith.cmpf one, %297, %297 : vector<16x32xf32>
    %299 = vector.broadcast %cst_99 : f32 to vector<16x32xf32>
    %300 = arith.addf %14, %299 : vector<16x32xf32>
    %301 = math.absf %297 : vector<16x32xf32>
    %cst_100 = arith.constant 0.000000e+00 : f32
    %302 = vector.broadcast %cst_100 : f32 to vector<16x32xf32>
    %303 = arith.subf %302, %301 : vector<16x32xf32>
    %304 = math.exp %303 : vector<16x32xf32>
    %305 = math.log1p %304 : vector<16x32xf32>
    %306 = arith.addf %295, %305 : vector<16x32xf32>
    %307 = arith.select %298, %300, %306 : vector<16x32xi1>, vector<16x32xf32>
    %308 = math.tanh %307 : vector<16x32xf32>
    %309 = arith.mulf %14, %308 : vector<16x32xf32>
    %310 = arith.addf %309, %1 : vector<16x32xf32>
    %c0_101 = arith.constant 0 : index
    %c0_102 = arith.constant 0 : index
    %311 = vector.load %arg23[%c0_101, %c0_102] : memref<1x32xf32, #tpu.memory_space<vmem>>, vector<1x32xf32>
    %c0_103 = arith.constant 0 : index
    %c0_104 = arith.constant 0 : index
    %312 = vector.load %arg24[%c0_103, %c0_104] : memref<1x32xf32, #tpu.memory_space<vmem>>, vector<1x32xf32>
    %cst_105 = arith.constant dense<0.000000e+00> : vector<16xf32>
    %313 = vector.multi_reduction <add>, %310, %cst_105 [1] : vector<16x32xf32> to vector<16xf32>
    %314 = vector.shape_cast %313 : vector<16xf32> to vector<16x1xf32>
    %cst_106 = arith.constant 3.200000e+01 : f32
    %315 = vector.broadcast %cst_106 : f32 to vector<16x1xf32>
    %316 = arith.divf %314, %315 : vector<16x1xf32>
    %317 = vector.broadcast %316 : vector<16x1xf32> to vector<16x32xf32>
    %318 = arith.subf %310, %317 : vector<16x32xf32>
    %319 = arith.mulf %318, %318 : vector<16x32xf32>
    %cst_107 = arith.constant dense<0.000000e+00> : vector<16xf32>
    %320 = vector.multi_reduction <add>, %319, %cst_107 [1] : vector<16x32xf32> to vector<16xf32>
    %321 = vector.shape_cast %320 : vector<16xf32> to vector<16x1xf32>
    %cst_108 = arith.constant 3.200000e+01 : f32
    %322 = vector.broadcast %cst_108 : f32 to vector<16x1xf32>
    %323 = arith.divf %321, %322 : vector<16x1xf32>
    %324 = vector.broadcast %316 : vector<16x1xf32> to vector<16x32xf32>
    %325 = arith.subf %310, %324 : vector<16x32xf32>
    %cst_109 = arith.constant 9.99999974E-6 : f32
    %326 = vector.broadcast %cst_109 : f32 to vector<16x1xf32>
    %327 = arith.addf %323, %326 : vector<16x1xf32>
    %328 = math.rsqrt %327 : vector<16x1xf32>
    %329 = vector.broadcast %328 : vector<16x1xf32> to vector<16x32xf32>
    %330 = arith.mulf %325, %329 : vector<16x32xf32>
    %331 = vector.broadcast %311 : vector<1x32xf32> to vector<16x32xf32>
    %332 = arith.mulf %330, %331 : vector<16x32xf32>
    %333 = vector.broadcast %312 : vector<1x32xf32> to vector<16x32xf32>
    %334 = arith.addf %332, %333 : vector<16x32xf32>
    %c0_110 = arith.constant 0 : index
    %335 = memref.load %arg1[%c0_110] : memref<3xf32, #tpu.memory_space<smem>>
    %336 = vector.broadcast %335 : f32 to vector<16x32xf32>
    %337 = arith.mulf %207, %336 : vector<16x32xf32>
    %c1 = arith.constant 1 : index
    %338 = memref.load %arg1[%c1] : memref<3xf32, #tpu.memory_space<smem>>
    %339 = vector.broadcast %338 : f32 to vector<16x32xf32>
    %340 = arith.mulf %293, %339 : vector<16x32xf32>
    %341 = arith.addf %337, %340 : vector<16x32xf32>
    %c2 = arith.constant 2 : index
    %342 = memref.load %arg1[%c2] : memref<3xf32, #tpu.memory_space<smem>>
    %343 = vector.broadcast %342 : f32 to vector<16x32xf32>
    %344 = arith.mulf %334, %343 : vector<16x32xf32>
    %345 = arith.addf %341, %344 : vector<16x32xf32>
    %346 = vector.shape_cast %345 : vector<16x32xf32> to vector<2x8x32xf32>
    %c0_111 = arith.constant 0 : index
    %c0_112 = arith.constant 0 : index
    %c0_113 = arith.constant 0 : index
    %347 = vector.load %arg25[%c0_111, %c0_112, %c0_113] : memref<2x8x32xf32, #tpu.memory_space<vmem>>, vector<2x8x32xf32>
    tpu.vector_store %arg25[%c0_111, %c0_112, %c0_113], %346 {strides = array<i32>} : memref<2x8x32xf32, #tpu.memory_space<vmem>>, vector<2x8x32xf32>,
    return
  }
  func.func @transform_0(%arg0: i32) -> i32 {
    %c0_i32 = arith.constant 0 : i32
    %c0_i32_0 = arith.constant 0 : i32
    return %c0_i32 : i32
  }
  func.func @transform_1(%arg0: i32) -> (i32, i32, i32) {
    %c0_i32 = arith.constant 0 : i32
    %c0_i32_0 = arith.constant 0 : i32
    %c0_i32_1 = arith.constant 0 : i32
    return %arg0, %c0_i32, %c0_i32_0 : i32, i32, i32
  }
  func.func @transform_2(%arg0: i32) -> (i32, i32) {
    %c0_i32 = arith.constant 0 : i32
    %c0_i32_0 = arith.constant 0 : i32
    %c0_i32_1 = arith.constant 0 : i32
    return %c0_i32, %c0_i32_0 : i32, i32
  }
  func.func @transform_3(%arg0: i32) -> (i32, i32) {
    %c0_i32 = arith.constant 0 : i32
    %c0_i32_0 = arith.constant 0 : i32
    %c0_i32_1 = arith.constant 0 : i32
    return %c0_i32, %c0_i32_0 : i32, i32
  }
  func.func @transform_4(%arg0: i32) -> (i32, i32) {
    %c0_i32 = arith.constant 0 : i32
    %c0_i32_0 = arith.constant 0 : i32
    %c0_i32_1 = arith.constant 0 : i32
    return %c0_i32, %c0_i32_0 : i32, i32
  }
  func.func @transform_5(%arg0: i32) -> (i32, i32) {
    %c0_i32 = arith.constant 0 : i32
    %c0_i32_0 = arith.constant 0 : i32
    %c0_i32_1 = arith.constant 0 : i32
    return %c0_i32, %c0_i32_0 : i32, i32
  }
  func.func @transform_6(%arg0: i32) -> (i32, i32) {
    %c0_i32 = arith.constant 0 : i32
    %c0_i32_0 = arith.constant 0 : i32
    %c0_i32_1 = arith.constant 0 : i32
    return %c0_i32, %c0_i32_0 : i32, i32
  }
  func.func @transform_7(%arg0: i32) -> (i32, i32) {
    %c0_i32 = arith.constant 0 : i32
    %c0_i32_0 = arith.constant 0 : i32
    %c0_i32_1 = arith.constant 0 : i32
    return %c0_i32, %c0_i32_0 : i32, i32
  }
  func.func @transform_8(%arg0: i32) -> (i32, i32) {
    %c0_i32 = arith.constant 0 : i32
    %c0_i32_0 = arith.constant 0 : i32
    %c0_i32_1 = arith.constant 0 : i32
    return %c0_i32, %c0_i32_0 : i32, i32
  }
  func.func @transform_9(%arg0: i32) -> (i32, i32) {
    %c0_i32 = arith.constant 0 : i32
    %c0_i32_0 = arith.constant 0 : i32
    %c0_i32_1 = arith.constant 0 : i32
    return %c0_i32, %c0_i32_0 : i32, i32
  }
  func.func @transform_10(%arg0: i32) -> (i32, i32) {
    %c0_i32 = arith.constant 0 : i32
    %c0_i32_0 = arith.constant 0 : i32
    %c0_i32_1 = arith.constant 0 : i32
    return %c0_i32, %c0_i32_0 : i32, i32
  }
  func.func @transform_11(%arg0: i32) -> (i32, i32) {
    %c0_i32 = arith.constant 0 : i32
    %c0_i32_0 = arith.constant 0 : i32
    %c0_i32_1 = arith.constant 0 : i32
    return %c0_i32, %c0_i32_0 : i32, i32
  }
  func.func @transform_12(%arg0: i32) -> (i32, i32) {
    %c0_i32 = arith.constant 0 : i32
    %c0_i32_0 = arith.constant 0 : i32
    %c0_i32_1 = arith.constant 0 : i32
    return %c0_i32, %c0_i32_0 : i32, i32
  }
  func.func @transform_13(%arg0: i32) -> (i32, i32) {
    %c0_i32 = arith.constant 0 : i32
    %c0_i32_0 = arith.constant 0 : i32
    %c0_i32_1 = arith.constant 0 : i32
    return %c0_i32, %c0_i32_0 : i32, i32
  }
  func.func @transform_14(%arg0: i32) -> (i32, i32) {
    %c0_i32 = arith.constant 0 : i32
    %c0_i32_0 = arith.constant 0 : i32
    %c0_i32_1 = arith.constant 0 : i32
    return %c0_i32, %c0_i32_0 : i32, i32
  }
  func.func @transform_15(%arg0: i32) -> (i32, i32) {
    %c0_i32 = arith.constant 0 : i32
    %c0_i32_0 = arith.constant 0 : i32
    %c0_i32_1 = arith.constant 0 : i32
    return %c0_i32, %c0_i32_0 : i32, i32
  }
  func.func @transform_16(%arg0: i32) -> (i32, i32) {
    %c0_i32 = arith.constant 0 : i32
    %c0_i32_0 = arith.constant 0 : i32
    %c0_i32_1 = arith.constant 0 : i32
    return %c0_i32, %c0_i32_0 : i32, i32
  }
  func.func @transform_17(%arg0: i32) -> (i32, i32) {
    %c0_i32 = arith.constant 0 : i32
    %c0_i32_0 = arith.constant 0 : i32
    %c0_i32_1 = arith.constant 0 : i32
    return %c0_i32, %c0_i32_0 : i32, i32
  }
  func.func @transform_18(%arg0: i32) -> (i32, i32) {
    %c0_i32 = arith.constant 0 : i32
    %c0_i32_0 = arith.constant 0 : i32
    %c0_i32_1 = arith.constant 0 : i32
    return %c0_i32, %c0_i32_0 : i32, i32
  }
  func.func @transform_19(%arg0: i32) -> (i32, i32) {
    %c0_i32 = arith.constant 0 : i32
    %c0_i32_0 = arith.constant 0 : i32
    %c0_i32_1 = arith.constant 0 : i32
    return %c0_i32, %c0_i32_0 : i32, i32
  }
  func.func @transform_20(%arg0: i32) -> (i32, i32) {
    %c0_i32 = arith.constant 0 : i32
    %c0_i32_0 = arith.constant 0 : i32
    %c0_i32_1 = arith.constant 0 : i32
    return %c0_i32, %c0_i32_0 : i32, i32
  }
  func.func @transform_21(%arg0: i32) -> (i32, i32) {
    %c0_i32 = arith.constant 0 : i32
    %c0_i32_0 = arith.constant 0 : i32
    %c0_i32_1 = arith.constant 0 : i32
    return %c0_i32, %c0_i32_0 : i32, i32
  }
  func.func @transform_22(%arg0: i32) -> (i32, i32) {
    %c0_i32 = arith.constant 0 : i32
    %c0_i32_0 = arith.constant 0 : i32
    %c0_i32_1 = arith.constant 0 : i32
    return %c0_i32, %c0_i32_0 : i32, i32
  }
  func.func @transform_23(%arg0: i32) -> (i32, i32) {
    %c0_i32 = arith.constant 0 : i32
    %c0_i32_0 = arith.constant 0 : i32
    %c0_i32_1 = arith.constant 0 : i32
    return %c0_i32, %c0_i32_0 : i32, i32
  }
  func.func @transform_24(%arg0: i32) -> (i32, i32, i32) {
    %c0_i32 = arith.constant 0 : i32
    %c0_i32_0 = arith.constant 0 : i32
    %c0_i32_1 = arith.constant 0 : i32
    return %arg0, %c0_i32, %c0_i32_0 : i32, i32, i32
  }
}

</mosaic_0001>

<bundles_post_ra>
// kernel: tpu_custom_call.1
= control target key start
LH: loop header
LB: loop body
LE: loop exit
PB: predicated region body
PF: predicated region fallthrough
CT: control target
= control target key end

     0   :  { %s2764_s0 = inlined_call_operand.vmem [shape: f32[3], index: 0, kind: input, shape index: {}]   ;;  %s2765_s1 = inlined_call_operand.vmem [shape: f32[2,8,32], index: 1, kind: input, shape index: {}]   ;;  %s2766_s2 = inlined_call_operand.vmem [shape: f32[32,256], index: 2, kind: input, shape index: {}]   ;;  %s2767_s3 = inlined_call_operand.vmem [shape: f32[1,256], index: 3, kind: input, shape index: {}]   ;;  %s2768_s4 = inlined_call_operand.vmem [shape: f32[32,32], index: 4, kind: input, shape index: {}]   ;;  %s2769_s5 = inlined_call_operand.vmem [shape: f32[1,32], index: 5, kind: input, shape index: {}]   ;;  %s2770_s6 = inlined_call_operand.vmem [shape: f32[1,32], index: 6, kind: input, shape index: {}]   ;;  %s2771_s7 = inlined_call_operand.vmem [shape: f32[1,32], index: 7, kind: input, shape index: {}]   ;;  %s2772_s8 = inlined_call_operand.vmem [shape: f32[32,128], index: 8, kind: input, shape index: {}]   ;;  %s2773_s9 = inlined_call_operand.vmem [shape: f32[1,128], index: 9, kind: input, shape index: {}]   ;;  %s2774_s10 = inlined_call_operand.vmem [shape: f32[1,128], index: 10, kind: input, shape index: {}]   ;;  %s2775_s11 = inlined_call_operand.vmem [shape: f32[1,128], index: 11, kind: input, shape index: {}]   ;;  %s2776_s12 = inlined_call_operand.vmem [shape: f32[128,32], index: 12, kind: input, shape index: {}]   ;;  %s2777_s13 = inlined_call_operand.vmem [shape: f32[1,32], index: 13, kind: input, shape index: {}]   ;;  %s2778_s14 = inlined_call_operand.vmem [shape: f32[1,32], index: 14, kind: input, shape index: {}]   ;;  %s2779_s15 = inlined_call_operand.vmem [shape: f32[1,32], index: 15, kind: input, shape index: {}]   ;;  %s2780_s16 = inlined_call_operand.vmem [shape: f32[1,128], index: 16, kind: input, shape index: {}]   ;;  %s2781_s17 = inlined_call_operand.vmem [shape: f32[1,128], index: 17, kind: input, shape index: {}]   ;;  %s2782_s18 = inlined_call_operand.vmem [shape: f32[128,32], index: 18, kind: input, shape index: {}]   ;;  %s2783_s19 = inlined_call_operand.vmem [shape: f32[1,32], index: 19, kind: input, shape index: {}]   ;;  %s2784_s20 = inlined_call_operand.vmem [shape: f32[1,32], index: 20, kind: input, shape index: {}]   ;;  %s2785_s21 = inlined_call_operand.vmem [shape: f32[1,32], index: 21, kind: input, shape index: {}]   ;;  %s2786_s22 = inlined_call_operand.vmem [shape: f32[1,32], index: 22, kind: input, shape index: {}]   ;;  %s2787_s23 = inlined_call_operand.vmem [shape: f32[1,32], index: 23, kind: input, shape index: {}]   ;;  %s2788_s24 = inlined_call_operand.hbm [shape: f32[2,8,32], index: 24, kind: output, shape index: {}]  }
   0x1   :  { %2793 = sst [smem:[#allocation8_spill]] %s2764_s0 }
   0x2   :  { %2794 = sst [smem:[#allocation9_spill]] %s2765_s1 }
   0x3   :  { %2795 = sst [smem:[#allocation10_spill]] %s2766_s2 }
   0x4   :  { %2796 = sst [smem:[#allocation11_spill]] %s2767_s3 }
   0x5   :  { %2797 = sst [smem:[#allocation12_spill]] %s2768_s4 }
   0x6   :  { %2798 = sst [smem:[#allocation13_spill]] %s2769_s5 }
   0x7   :  { %2799 = sst [smem:[#allocation14_spill]] %s2770_s6 }
   0x8   :  { %2800 = sst [smem:[#allocation15_spill]] %s2771_s7 }
   0x9   :  { %2801 = sst [smem:[#allocation16_spill]] %s2772_s8 }
   0xa   :  { %29 = vsyncpa [#allocation4], 0 }
   0xb   :  { %30 = vsyncpa [#allocation3], 0  ;;  %s2802_s27 = sld [smem:[#allocation8_spill]]  ;;  %s2020_s6 = smov [#allocation2]  }
  0x11   :  { %s36_s28 = sshll.u32 %s2802_s27, 4  ;;  %s37_s28 = int_to_ptr.vmem [resolvable:$true] %s36_s28 }
  0x12   :  { %39 = dma.vmem_to_smem %s37_s28, 16, %s2020_s6, [#allocation4]  }
  0x13   :  { %2016 = dma.done.wait [#allocation4], 16  }
  0x14   :  { %2017 = vsyncadd [#allocation4], 4294967280 }
  0x15   :  { %90 = sfence }
  0x16   :  { %s2803_s0 = sld [smem:[#allocation10_spill]]  ;;  %vm107_vm0 = vcmask 261120   ;;  %s2021_s27 = smov 64   ;;  %vm167_vm1 = vcmask 64512  }
  0x17   :  { %s2804_s26 = sld [smem:[#allocation9_spill]]  ;;  %s2022_s28 = smov 96  }
  0x18   :  { %s2805_s5 = sld [smem:[#allocation11_spill]]  ;;  %s2024_s6 = smov 120  }
  0x19   :  { %s2025_s2 = smov 56   ;;  %s2026_s29 = smov 80  }
  0x1a   :  { %s2027_s7 = smov 112   ;;  %s2806_s25 = sld [smem:[#allocation12_spill]] }
  0x1b   :  { %s2028_s8 = smov 72   ;;  %s2029_s4 = smov 104  }
  0x1c   :  { %v99_v0 = vld [vmem:[%s2803_s0 + $0x30] sm:$0xff]  ;;  %v97_v1 = vld [vmem:[%s2803_s0 + $0x20] sm:$0xff]  ;;  %v100_v6 = vld [vmem:[%s2803_s0 + $0x38] sm:$0xff] }
  0x1d   :  { %126 = vmatpush.msra.mxu0 %v99_v0  ;;  %v95_v2 = vld [vmem:[%s2803_s0 + $0x10] sm:$0xff]  ;;  %v93_v3 = vld [vmem:[%s2803_s0] sm:$0xff]  ;;  %v2188_v5 = vld [vmem:[%s2804_s26 + $0x8] sm:$0xff]  ;;  %149 = vmatpush.msra.mxu1 %v100_v6 }
  0x1e   :  { %v2181_v4 = vld [vmem:[%s2804_s26] sm:$0xff]  ;;  %v98_v7 = vld [vmem:[%s2803_s0 + $0x28] sm:$0xff]  ;;  %v96_v8 = vld [vmem:[%s2803_s0 + $0x18] sm:$0xff] }
  0x1f   :  { %127 = vmatpush.msra.mxu0 %v97_v1  ;;  %150 = vmatpush.msra.mxu1 %v98_v7  ;;  %v94_v9 = vld [vmem:[%s2803_s0 + $0x8] sm:$0xff]  ;;  %v2207_v10 = vld [vmem:[%s2805_s5] sm:$0x3]  ;;  %s2023_s0 = smov 88   ;;  %s2808_s5 = sld [smem:[#allocation16_spill]] }
  0x20   :  { %v103_v11 = vperm.slane %v2207_v10, 0  ;;  %v104_v19 = vperm.slane %v2207_v10, 1 }
  0x21   :  { %128 = vmatpush.msra.mxu0 %v95_v2  ;;  %151 = vmatpush.msra.mxu1 %v96_v8 }
  0x23   :  { %129 = vmatpush.msra.mxu0 %v93_v3  ;;  %152 = vmatpush.msra.mxu1 %v94_v9 }
  0x24   :  { %1757 = vmatmul.msk.f32.vlgmr.msra.gmra.mxu0 %vm107_vm0, %v2181_v4  ;;  %1759 = vmatmul.msk.f32.vlgmr.msra.gmra.mxu1 %vm107_vm0, %v2181_v4 }
  0x2c   :  { %1758 = vmatmul.msk.f32.gmra.mxu0 %vm107_vm0, %v2188_v5  ;;  %1760 = vmatmul.msk.f32.gmra.mxu1 %vm107_vm0, %v2188_v5 }
  0xa1   :  { %v131_v12 = vpop.f32.mrf.mxu0  ;;  %v154_v20 = vpop.f32.mrf.mxu1 }
  0xa2   :  { %v2212_v13 = vadd.f32 %v131_v12, %v103_v11  ;;  %v2235_v21 = vadd.f32 %v154_v20, %v104_v19 }
  0xa4   :  { %267 = vrot.lane.b32.xlu2 %v2212_v13, %s2021_s27  ;;  %165 = vrot.lane.b32.xlu0 %v2212_v13, %s2022_s28 }
  0xa9   :  { %v134_v14 = vpop.f32.mrf.mxu0  ;;  %v2240_v23 = vpop.f32.mrf.mxu1 }
  0xaa   :  { %v2219_v15 = vadd.f32 %v134_v14, %v103_v11 }
  0xac   :  { %321 = vrot.lane.b32.xlu2 %v2212_v13, %s2023_s0  ;;  %193 = vrot.lane.b32.xlu0 %v2219_v15, %s2022_s28 }
  0xb4   :  { %319 = vrot.lane.b32.xlu0 %v2212_v13, %s2024_s6 }
  0xbc   :  { %293 = vrot.lane.b32.xlu0 %v2219_v15, %s2021_s27  ;;  %s2030_s27 = smov 48  }
  0xfe   :  { %v268_v16 = vpop.permute.xlu2 %267 }
  0xff   :  { %288 = vmatpush.msra.mxu2 %v268_v16  ;;  %v160_v16 = vld [vmem:[%s2806_s25] sm:$0xff] }
 0x106   :  { %v322_v17 = vpop.permute.xlu2 %321 }
 0x107   :  { %1767 = vmatpush.xpose.msk.msrb.mxu2 %vm167_vm1, %v322_v17 }
 0x116   :  { %v166_v18 = vpop.permute.xlu0 %165 }
 0x117   :  { %1761 = vmatpush.xpose.msk.msrb.mxu1 %vm167_vm1, %v166_v18 }
 0x11a   :  { %1762 = vmatmul.msk.f32.vlgmr.msrb.gmra.mxu1 %vm167_vm1, %v2212_v13 }
 0x11e   :  { %v194_v22 = vpop.permute.xlu0 %193 }
 0x11f   :  { %1763 = vmatpush.xpose.msk.msra.mxu3 %vm167_vm1, %v194_v22 }
 0x122   :  { %1764 = vmatmul.msk.f32.vlgmr.msra.gmra.mxu3 %vm167_vm1, %v2219_v15 }
 0x126   :  { %v320_v26 = vpop.permute.xlu0 %319 }
 0x12e   :  { %v294_v27 = vpop.permute.xlu0 %293 }
 0x12f   :  { %314 = vmatpush.msrb.mxu3 %v294_v27 }
 0x197   :  { %v189_v24 = vpop.f32.mrf.mxu1 }
 0x198   :  { %v219_v25 = vsel %vm167_vm1, %v189_v24, -inf }
 0x199   :  { %220 = vmax.xlane.f32.xlu1 %v219_v25 }
 0x1a5   :  { %v216_v33 = vpop.f32.mrf.mxu3 }
 0x1a6   :  { %v222_v34 = vsel %vm167_vm1, %v216_v33, -inf }
 0x20c   :  { %v221_v28 = vpop.xlane.xlu1 %220 }
 0x20d   :  { %v225_v29 = vsub.f32 %v189_v24, %v221_v28 }
 0x20f   :  { %v227_v30 = vmul.f32 1.442695, %v225_v29 }
 0x211   :  { %1846 = vpow2.f32 %v227_v30 }
 0x217   :  { %v1847_v31 = vpop.eup %1846 }
 0x218   :  { %v231_v32 = vsel %vm167_vm1, %v1847_v31, 0.0 }
 0x219   :  { %232 = vadd.xlane.f32.xlu1 %v231_v32 }
 0x221   :  { %223 = vmax.xlane.f32.xlu1 %v222_v34 }
 0x28c   :  { %v233_v35 = vpop.xlane.xlu1 %232 }
 0x28d   :  { %1848 = vrcp.f32 %v233_v35  ;;  %v248_v41 = vand.u32 2147483648, %v233_v35  ;;  %v246_v44 = vand.u32 2147483647, %v233_v35  ;;  %vm242_vm3 = vweird.f32 %v233_v35 }
 0x28f   :  { %v249_v46 = vor.u32 1.1754944e-38, %v248_v41  ;;  %vm247_vm5 = vcmp.eq.f32.partialorder %v246_v44, 8.507059e+37 }
 0x293   :  { %v1849_v36 = vpop.eup %1848 }
 0x294   :  { %v238_v37 = vmul.f32 %v1849_v36, %v233_v35  ;;  %v224_v38 = vpop.xlane.xlu1 %223  ;;  %vm243_vm2 = vweird.f32 %v1849_v36 }
 0x295   :  { %v226_v39 = vsub.f32 %v216_v33, %v224_v38  ;;  %vm244_vm4 = vmor %vm242_vm3, %vm243_vm2 }
 0x296   :  { %v239_v40 = vsub.f32 1.0, %v238_v37  ;;  %v161_v37 = vld [vmem:[%s2806_s25 + $0x8] sm:$0xff] }
 0x297   :  { %v229_v42 = vmul.f32 1.442695, %v226_v39 }
 0x298   :  { %v240_v43 = vmul.f32 %v1849_v36, %v239_v40 }
 0x299   :  { %1850 = vpow2.f32 %v229_v42 }
 0x29a   :  { %v241_v45 = vadd.f32 %v1849_v36, %v240_v43 }
 0x29c   :  { %v245_v47 = vsel %vm244_vm4, %v1849_v36, %v241_v45 }
 0x29d   :  { %v250_v48 = vsel %vm247_vm5, %v249_v46, %v245_v47 }
 0x29e   :  { %v251_v49 = vmul.f32 %v1847_v31, %v250_v48 }
 0x29f   :  { %v1851_v50 = vpop.eup %1850 }
 0x2a0   :  { %1765 = vmatmul.msk.f32.vlgmr.msra.gmra.mxu2 %vm167_vm1, %v251_v49  ;;  %v234_v51 = vsel %vm167_vm1, %v1851_v50, 0.0 }
 0x2a1   :  { %235 = vadd.xlane.f32.xlu2 %v234_v51  ;;  %496 = vmatpush.msra.mxu2 %v161_v37 }
 0x2a8   :  { %1768 = vmatmul.msk.f32.vlgmr.msrb.gmra.mxu2 %vm167_vm1, %v320_v26 }
 0x2b9   :  { %347 = vrot.lane.b32.xlu2 %v2219_v15, %s2024_s6  ;;  %s2032_s6 = smov 32  }
 0x314   :  { %v236_v52 = vpop.xlane.xlu2 %235 }
 0x315   :  { %1852 = vrcp.f32 %v236_v52  ;;  %v263_v56 = vand.u32 2147483648, %v236_v52  ;;  %v261_v58 = vand.u32 2147483647, %v236_v52  ;;  %vm257_vm7 = vweird.f32 %v236_v52 }
 0x317   :  { %v264_v60 = vor.u32 1.1754944e-38, %v263_v56  ;;  %vm262_vm9 = vcmp.eq.f32.partialorder %v261_v58, 8.507059e+37 }
 0x31b   :  { %v1853_v53 = vpop.eup %1852 }
 0x31c   :  { %v253_v54 = vmul.f32 %v1853_v53, %v236_v52  ;;  %vm258_vm6 = vweird.f32 %v1853_v53  ;;  %v348_v14 = vpop.permute.xlu2 %347 }
 0x31d   :  { %vm259_vm8 = vmor %vm257_vm7, %vm258_vm6 }
 0x31e   :  { %v254_v55 = vsub.f32 1.0, %v253_v54 }
 0x320   :  { %v255_v57 = vmul.f32 %v1853_v53, %v254_v55 }
 0x322   :  { %v256_v59 = vadd.f32 %v1853_v53, %v255_v57 }
 0x323   :  { %v290_v61 = vpop.f32.mrf.mxu2 }
 0x324   :  { %v260_v62 = vsel %vm259_vm8, %v1853_v53, %v256_v59 }
 0x325   :  { %v265_v63 = vsel %vm262_vm9, %v264_v60, %v260_v62 }
 0x326   :  { %v266_v0 = vmul.f32 %v1851_v50, %v265_v63 }
 0x328   :  { %1766 = vmatmul.msk.f32.vlgmr.msrb.gmra.mxu3 %vm167_vm1, %v266_v0 }
 0x32b   :  { %v344_v1 = vpop.f32.mrf.mxu2 }
 0x32c   :  { %v375_v2 = vsel %vm167_vm1, %v344_v1, -inf }
 0x32d   :  { %376 = vmax.xlane.f32.xlu1 %v375_v2 }
 0x346   :  { %423 = vrot.lane.b32.xlu1 %v2212_v13, %s2025_s2 }
 0x34e   :  { %349 = vrot.lane.b32.xlu1 %v2219_v15, %s2023_s0  ;;  %s2031_s0 = smov 40  }
 0x356   :  { %535 = vrot.lane.b32.xlu1 %v2212_v13, %s2026_s29 }
 0x35e   :  { %533 = vrot.lane.b32.xlu1 %v2212_v13, %s2027_s7 }
 0x3a0   :  { %v377_v3 = vpop.xlane.xlu1 %376 }
 0x3a1   :  { %v381_v6 = vsub.f32 %v344_v1, %v377_v3 }
 0x3a3   :  { %v383_v7 = vmul.f32 1.442695, %v381_v6 }
 0x3a5   :  { %1854 = vpow2.f32 %v383_v7 }
 0x3ab   :  { %v1855_v8 = vpop.eup %1854  ;;  %v316_v33 = vpop.f32.mrf.mxu3 }
 0x3ac   :  { %v387_v9 = vsel %vm167_vm1, %v1855_v8, 0.0 }
 0x3ad   :  { %388 = vadd.xlane.f32.xlu0 %v387_v9 }
 0x3b8   :  { %v424_v11 = vpop.permute.xlu1 %423 }
 0x3b9   :  { %444 = vmatpush.msrb.mxu0 %v424_v11 }
 0x3bb   :  { %525 = vmatpush.msra.mxu0 %v160_v16 }
 0x3c0   :  { %v350_v12 = vpop.permute.xlu1 %349 }
 0x3c1   :  { %1769 = vmatpush.xpose.msk.msra.mxu3 %vm167_vm1, %v350_v12 }
 0x3c4   :  { %1770 = vmatmul.msk.f32.vlgmr.msra.gmra.mxu3 %vm167_vm1, %v348_v14 }
 0x3c8   :  { %v536_v32 = vpop.permute.xlu1 %535 }
 0x3d0   :  { %v534_v36 = vpop.permute.xlu1 %533 }
 0x420   :  { %v389_v17 = vpop.xlane.xlu0 %388 }
 0x421   :  { %1856 = vrcp.f32 %v389_v17  ;;  %v404_v24 = vand.u32 2147483648, %v389_v17  ;;  %v402_v26 = vand.u32 2147483647, %v389_v17  ;;  %vm398_vm11 = vweird.f32 %v389_v17 }
 0x423   :  { %v405_v28 = vor.u32 1.1754944e-38, %v404_v24  ;;  %vm403_vm13 = vcmp.eq.f32.partialorder %v402_v26, 8.507059e+37 }
 0x427   :  { %v1857_v18 = vpop.eup %1856 }
 0x428   :  { %v394_v20 = vmul.f32 %v1857_v18, %v389_v17  ;;  %vm399_vm10 = vweird.f32 %v1857_v18 }
 0x429   :  { %vm400_vm12 = vmor %vm398_vm11, %vm399_vm10 }
 0x42a   :  { %v395_v22 = vsub.f32 1.0, %v394_v20 }
 0x42c   :  { %v396_v25 = vmul.f32 %v1857_v18, %v395_v22 }
 0x42e   :  { %v397_v27 = vadd.f32 %v1857_v18, %v396_v25 }
 0x430   :  { %v401_v29 = vsel %vm400_vm12, %v1857_v18, %v397_v27 }
 0x431   :  { %v406_v30 = vsel %vm403_vm13, %v405_v28, %v401_v29 }
 0x432   :  { %v407_v31 = vmul.f32 %v1855_v8, %v406_v30 }
 0x434   :  { %1771 = vmatmul.msk.f32.vlgmr.msrb.gmra.mxu0 %vm167_vm1, %v407_v31 }
 0x435   :  { %1777 = vmatpush.xpose.msk.msrb.mxu0 %vm167_vm1, %v536_v32 }
 0x43c   :  { %1775 = vmatmul.msk.f32.vlgmr.msra.gmra.mxu0 %vm167_vm1, %v290_v61 }
 0x444   :  { %1776 = vmatmul.msk.f32.gmra.mxu0 %vm167_vm1, %v316_v33 }
 0x447   :  { %v372_v34 = vpop.f32.mrf.mxu3 }
 0x448   :  { %v378_v35 = vsel %vm167_vm1, %v372_v34, -inf }
 0x449   :  { %379 = vmax.xlane.f32.xlu0 %v378_v35 }
 0x44c   :  { %1778 = vmatmul.msk.f32.vlgmr.msrb.gmra.mxu0 %vm167_vm1, %v534_v36 }
 0x45d   :  { %449 = vrot.lane.b32.xlu0 %v2219_v15, %s2025_s2 }
 0x465   :  { %563 = vrot.lane.b32.xlu0 %v2219_v15, %s2026_s29  ;;  %s1744_s29 = sshll.u32 %s2788_s24, 4  ;;  %s1745_s29 = int_to_ptr.hbm [resolvable:$true] %s1744_s29 }
 0x46d   :  { %722 = vrot.lane.b32.xlu0 %v2212_v13, %s2028_s8 }
 0x475   :  { %720 = vrot.lane.b32.xlu0 %v2212_v13, %s2029_s4 }
 0x47d   :  { %750 = vrot.lane.b32.xlu0 %v2219_v15, %s2028_s8  ;;  %s2807_s8 = sld [smem:[#allocation13_spill]] }
 0x4b1   :  { %v446_v38 = vpop.f32.mrf.mxu0 }
 0x4b2   :  { %1773 = vmatmul.msk.f32.vlgmr.msra.gmra.mxu2 %vm167_vm1, %v446_v38 }
 0x4b9   :  { %v2284_v39 = vpop.f32.mrf.mxu0 }
 0x4bc   :  { %v380_v40 = vpop.xlane.xlu0 %379 }
 0x4bd   :  { %v382_v41 = vsub.f32 %v372_v34, %v380_v40  ;;  %v1815_v40 = vpack.i.bf16 %v2219_v15, %v2212_v13 }
 0x4bf   :  { %v385_v42 = vmul.f32 1.442695, %v382_v41  ;;  %v2321_v41 = vadd.f32 %v2240_v23, %v104_v19 }
 0x4c1   :  { %1858 = vpow2.f32 %v385_v42  ;;  %v2286_v43 = vpop.f32.mrf.mxu0  ;;  %v162_v42 = vld [vmem:[%s2806_s25 + $0x10] sm:$0xff] }
 0x4c2   :  { %710 = vmatpush.msrb.mxu2 %v162_v42 }
 0x4c7   :  { %v1859_v44 = vpop.eup %1858 }
 0x4c8   :  { %v390_v45 = vsel %vm167_vm1, %v1859_v44, 0.0 }
 0x4c9   :  { %v558_v46 = vpop.f32.mrf.mxu0  ;;  %391 = vadd.xlane.f32.xlu2 %v390_v45 }
 0x4ca   :  { %v589_v47 = vsel %vm167_vm1, %v558_v46, -inf }
 0x4cb   :  { %590 = vmax.xlane.f32.xlu1 %v589_v47 }
 0x4cf   :  { %v450_v48 = vpop.permute.xlu0 %449 }
 0x4d0   :  { %470 = vmatpush.msra.mxu1 %v450_v48 }
 0x4d7   :  { %v564_v49 = vpop.permute.xlu0 %563 }
 0x4d8   :  { %1779 = vmatpush.xpose.msk.msrb.mxu1 %vm167_vm1, %v564_v49 }
 0x4df   :  { %v723_v50 = vpop.permute.xlu0 %722 }
 0x4e0   :  { %1785 = vmatpush.xpose.msk.msrb.mxu3 %vm167_vm1, %v723_v50 }
 0x4e1   :  { %561 = vrot.lane.b32.xlu2 %v2219_v15, %s2027_s7  ;;  %s2037_s7 = smov 8  }
 0x4e4   :  { %637 = vrot.lane.b32.xlu1 %v2212_v13, %s2030_s27 }
 0x4e7   :  { %v721_v51 = vpop.permute.xlu0 %720 }
 0x4e8   :  { %1786 = vmatmul.msk.f32.vlgmr.msrb.gmra.mxu3 %vm167_vm1, %v721_v51 }
 0x4ef   :  { %v751_v8 = vpop.permute.xlu0 %750 }
 0x53c   :  { %v392_v52 = vpop.xlane.xlu2 %391 }
 0x53d   :  { %1860 = vrcp.f32 %v392_v52  ;;  %v419_v59 = vand.u32 2147483648, %v392_v52  ;;  %v417_v61 = vand.u32 2147483647, %v392_v52  ;;  %vm413_vm15 = vweird.f32 %v392_v52 }
 0x53e   :  { %v591_v53 = vpop.xlane.xlu1 %590 }
 0x53f   :  { %v595_v54 = vsub.f32 %v558_v46, %v591_v53  ;;  %v420_v1 = vor.u32 1.1754944e-38, %v419_v59  ;;  %vm418_vm3 = vcmp.eq.f32.partialorder %v417_v61, 8.507059e+37 }
 0x541   :  { %v597_v55 = vmul.f32 1.442695, %v595_v54 }
 0x543   :  { %v1861_v56 = vpop.eup %1860  ;;  %1862 = vpow2.f32 %v597_v55 }
 0x544   :  { %v409_v57 = vmul.f32 %v1861_v56, %v392_v52  ;;  %vm414_vm14 = vweird.f32 %v1861_v56  ;;  %v562_v9 = vpop.permute.xlu2 %561 }
 0x545   :  { %vm415_vm2 = vmor %vm413_vm15, %vm414_vm14 }
 0x546   :  { %v410_v58 = vsub.f32 1.0, %v409_v57 }
 0x548   :  { %v411_v60 = vmul.f32 %v1861_v56, %v410_v58 }
 0x549   :  { %v1863_v62 = vpop.eup %1862 }
 0x54a   :  { %v412_v63 = vadd.f32 %v1861_v56, %v411_v60  ;;  %v601_v0 = vsel %vm167_vm1, %v1863_v62, 0.0 }
 0x54b   :  { %602 = vadd.xlane.f32.xlu0 %v601_v0 }
 0x54c   :  { %v416_v2 = vsel %vm415_vm2, %v1861_v56, %v412_v63 }
 0x54d   :  { %v421_v3 = vsel %vm418_vm3, %v420_v1, %v416_v2 }
 0x54e   :  { %v422_v6 = vmul.f32 %v1859_v44, %v421_v3 }
 0x550   :  { %1772 = vmatmul.msk.f32.vlgmr.msra.gmra.mxu1 %vm167_vm1, %v422_v6 }
 0x556   :  { %v638_v7 = vpop.permute.xlu1 %637 }
 0x557   :  { %658 = vmatpush.msra.mxu0 %v638_v7 }
 0x558   :  { %1780 = vmatmul.msk.f32.vlgmr.msrb.gmra.mxu1 %vm167_vm1, %v562_v9 }
 0x559   :  { %1787 = vmatpush.xpose.msk.msrb.mxu0 %vm167_vm1, %v751_v8 }
 0x55f   :  { %748 = vrot.lane.b32.xlu0 %v2219_v15, %s2029_s4 }
 0x56b   :  { %v745_v11 = vpop.f32.mrf.mxu3 }
 0x56c   :  { %v776_v12 = vsel %vm167_vm1, %v745_v11, -inf }
 0x56d   :  { %777 = vmax.xlane.f32.xlu1 %v776_v12 }
 0x5be   :  { %v603_v14 = vpop.xlane.xlu0 %602 }
 0x5bf   :  { %1864 = vrcp.f32 %v603_v14  ;;  %v618_v20 = vand.u32 2147483648, %v603_v14  ;;  %v616_v24 = vand.u32 2147483647, %v603_v14  ;;  %vm612_vm5 = vweird.f32 %v603_v14 }
 0x5c1   :  { %v619_v26 = vor.u32 1.1754944e-38, %v618_v20  ;;  %vm617_vm7 = vcmp.eq.f32.partialorder %v616_v24, 8.507059e+37 }
 0x5c5   :  { %v1865_v16 = vpop.eup %1864 }
 0x5c6   :  { %v608_v17 = vmul.f32 %v1865_v16, %v603_v14  ;;  %vm613_vm4 = vweird.f32 %v1865_v16 }
 0x5c7   :  { %vm614_vm6 = vmor %vm612_vm5, %vm613_vm4 }
 0x5c8   :  { %v609_v18 = vsub.f32 1.0, %v608_v17 }
 0x5ca   :  { %v610_v22 = vmul.f32 %v1865_v16, %v609_v18 }
 0x5cc   :  { %v611_v25 = vadd.f32 %v1865_v16, %v610_v22 }
 0x5cd   :  { %v472_v27 = vpop.f32.mrf.mxu1 }
 0x5ce   :  { %v615_v28 = vsel %vm614_vm6, %v1865_v16, %v611_v25  ;;  %1774 = vmatmul.msk.f32.gmra.mxu2 %vm167_vm1, %v472_v27 }
 0x5cf   :  { %v620_v29 = vsel %vm617_vm7, %v619_v26, %v615_v28 }
 0x5d0   :  { %v621_v30 = vmul.f32 %v1863_v62, %v620_v29 }
 0x5d1   :  { %v749_v33 = vpop.permute.xlu0 %748 }
 0x5d2   :  { %1781 = vmatmul.msk.f32.vlgmr.msra.gmra.mxu0 %vm167_vm1, %v621_v30  ;;  %v2033_v30 = vmov 128.0  }
 0x5d5   :  { %v586_v31 = vpop.f32.mrf.mxu1 }
 0x5d6   :  { %v592_v32 = vsel %vm167_vm1, %v586_v31, -inf }
 0x5d7   :  { %593 = vmax.xlane.f32.xlu2 %v592_v32 }
 0x5da   :  { %1788 = vmatmul.msk.f32.vlgmr.msrb.gmra.mxu0 %vm167_vm1, %v749_v33 }
 0x5e0   :  { %v778_v34 = vpop.xlane.xlu1 %777 }
 0x5e1   :  { %v782_v35 = vsub.f32 %v745_v11, %v778_v34 }
 0x5e3   :  { %v784_v36 = vmul.f32 1.442695, %v782_v35 }
 0x5e5   :  { %1866 = vpow2.f32 %v784_v36 }
 0x5eb   :  { %v2308_v37 = vpop.eup %1866 }
 0x5ec   :  { %v788_v38 = vsel %vm167_vm1, %v2308_v37, 0.0 }
 0x5ed   :  { %789 = vadd.xlane.f32.xlu1 %v788_v38 }
 0x606   :  { %1816 = vrot.lane.b32.xlu1 %v1815_v40, %s2031_s0 }
 0x60e   :  { %1259 = vrot.lane.b32.xlu1 %v2212_v13, %s2032_s6 }
 0x616   :  { %1263 = vrot.lane.b32.xlu1 %v2219_v15, %s2032_s6 }
 0x61e   :  { %1265 = vrot.lane.b32.xlu1 %v2321_v41, %s2032_s6 }
 0x64a   :  { %v594_v44 = vpop.xlane.xlu2 %593 }
 0x64b   :  { %v596_v45 = vsub.f32 %v586_v31, %v594_v44  ;;  %v163_v44 = vld [vmem:[%s2806_s25 + $0x18] sm:$0xff] }
 0x64c   :  { %897 = vmatpush.msra.mxu0 %v163_v44 }
 0x64d   :  { %v599_v46 = vmul.f32 1.442695, %v596_v45 }
 0x64f   :  { %1868 = vpow2.f32 %v599_v46  ;;  %v660_v47 = vpop.f32.mrf.mxu0 }
 0x650   :  { %1783 = vmatmul.msk.f32.vlgmr.msrb.gmra.mxu2 %vm167_vm1, %v660_v47 }
 0x655   :  { %v1869_v48 = vpop.eup %1868 }
 0x656   :  { %v604_v10 = vsel %vm167_vm1, %v1869_v48, 0.0 }
 0x657   :  { %605 = vadd.xlane.f32.xlu2 %v604_v10  ;;  %v773_v19 = vpop.f32.mrf.mxu0 }
 0x658   :  { %v779_v23 = vsel %vm167_vm1, %v773_v19, -inf }
 0x659   :  { %780 = vmax.xlane.f32.xlu0 %v779_v23 }
 0x660   :  { %v790_v49 = vpop.xlane.xlu1 %789 }
 0x661   :  { %1870 = vrcp.f32 %v790_v49  ;;  %v805_v20 = vand.u32 2147483648, %v790_v49  ;;  %vm799_vm13 = vweird.f32 %v790_v49  ;;  %v803_v24 = vand.u32 2147483647, %v790_v49 }
 0x663   :  { %v806_v27 = vor.u32 1.1754944e-38, %v805_v20  ;;  %vm804_vm15 = vcmp.eq.f32.partialorder %v803_v24, 8.507059e+37 }
 0x667   :  { %v1871_v57 = vpop.eup %1870 }
 0x668   :  { %v795_v60 = vmul.f32 %v1871_v57, %v790_v49  ;;  %vm800_vm11 = vweird.f32 %v1871_v57 }
 0x669   :  { %vm801_vm14 = vmor %vm799_vm13, %vm800_vm11 }
 0x66a   :  { %v796_v63 = vsub.f32 1.0, %v795_v60 }
 0x66c   :  { %v797_v7 = vmul.f32 %v1871_v57, %v796_v63 }
 0x66e   :  { %v798_v17 = vadd.f32 %v1871_v57, %v797_v7  ;;  %v2034_v7 = vmov 32.0  }
 0x66f   :  { %663 = vrot.lane.b32.xlu2 %v2219_v15, %s2030_s27 }
 0x670   :  { %v802_v26 = vsel %vm801_vm14, %v1871_v57, %v798_v17  ;;  %v498_v57 = vpop.f32.mrf.mxu2 }
 0x671   :  { %v807_v28 = vsel %vm804_vm15, %v806_v27, %v802_v26  ;;  %v528_v60 = vadd.f32 %v2284_v39, %v498_v57 }
 0x672   :  { %v808_v29 = vmul.f32 %v2308_v37, %v807_v28 }
 0x678   :  { %v1817_v50 = vpop.permute.xlu1 %1816 }
 0x679   :  { %v1819_v51 = vunpack.i.h.bf16 %v1817_v50  ;;  %v1818_v0 = vunpack.i.l.bf16 %v1817_v50 }
 0x67b   :  { %871 = vmatpush.msra.mxu3 %v1819_v51 }
 0x680   :  { %v2333_v52 = vpop.permute.xlu1 %1259 }
 0x688   :  { %v1264_v53 = vpop.permute.xlu1 %1263 }
 0x690   :  { %v1266_v54 = vpop.permute.xlu1 %1265 }
 0x691   :  { %v1268_v55 = vsel %vm107_vm0, %v1264_v53, %v1266_v54 }
 0x692   :  { %1273 = vadd.xlane.f32.xlu1 %v1268_v55 }
 0x6ca   :  { %v606_v56 = vpop.xlane.xlu2 %605 }
 0x6cb   :  { %1872 = vrcp.f32 %v606_v56  ;;  %v633_v6 = vand.u32 2147483648, %v606_v56  ;;  %v631_v9 = vand.u32 2147483647, %v606_v56  ;;  %vm627_vm9 = vweird.f32 %v606_v56 }
 0x6cc   :  { %v781_v58 = vpop.xlane.xlu0 %780 }
 0x6cd   :  { %v783_v59 = vsub.f32 %v773_v19, %v781_v58  ;;  %v634_v16 = vor.u32 1.1754944e-38, %v633_v6  ;;  %vm632_vm12 = vcmp.eq.f32.partialorder %v631_v9, 8.507059e+37  ;;  %v501_v58 = vpop.f32.mrf.mxu2 }
 0x6cf   :  { %v786_v61 = vmul.f32 1.442695, %v783_v59 }
 0x6d1   :  { %v1873_v62 = vpop.eup %1872  ;;  %1874 = vpow2.f32 %v786_v61 }
 0x6d2   :  { %v623_v1 = vmul.f32 %v1873_v62, %v606_v56  ;;  %v664_v2 = vpop.permute.xlu2 %663  ;;  %vm628_vm8 = vweird.f32 %v1873_v62  ;;  %1876 = vrcp.f32 %v2033_v30 }
 0x6d3   :  { %684 = vmatpush.msra.mxu1 %v664_v2  ;;  %vm629_vm10 = vmor %vm627_vm9, %vm628_vm8 }
 0x6d4   :  { %v624_v3 = vsub.f32 1.0, %v623_v1 }
 0x6d5   :  { %845 = vmatpush.msrb.mxu1 %v1818_v0  ;;  %v712_v59 = vpop.f32.mrf.mxu2 }
 0x6d6   :  { %v625_v8 = vmul.f32 %v1873_v62, %v624_v3  ;;  %v718_v61 = vadd.f32 %v712_v59, %v528_v60 }
 0x6d7   :  { %v1875_v11 = vpop.eup %1874 }
 0x6d8   :  { %v626_v12 = vadd.f32 %v1873_v62, %v625_v8  ;;  %v791_v14 = vsel %vm167_vm1, %v1875_v11, 0.0  ;;  %v1877_v31 = vpop.eup %1876 }
 0x6d9   :  { %792 = vadd.xlane.f32.xlu0 %v791_v14  ;;  %v1022_v32 = vmul.f32 128.0, %v1877_v31  ;;  %vm1026_vm2 = vweird.f32 %v1877_v31 }
 0x6da   :  { %v630_v18 = vsel %vm629_vm10, %v1873_v62, %v626_v12  ;;  %v1830_v62 = vld [vmem:[%s2807_s8] ss:$0 sm:$0xff]  ;;  %s2809_s8 = sld [smem:[#allocation14_spill]] }
 0x6db   :  { %v635_v22 = vsel %vm632_vm12, %v634_v16, %v630_v18  ;;  %v1023_v33 = vsub.f32 1.0, %v1022_v32  ;;  %v531_v16 = vadd.f32 %v2286_v43, %v501_v58  ;;  %v981_v43 = vld [vmem:[%s2808_s5 + $0x18] sm:$0xff] }
 0x6dc   :  { %v636_v25 = vmul.f32 %v1869_v48, %v635_v22 }
 0x6dd   :  { %v1024_v34 = vmul.f32 %v1877_v31, %v1023_v33  ;;  %v979_v33 = vld [vmem:[%s2808_s5 + $0x8] sm:$0xff] }
 0x6de   :  { %1782 = vmatmul.msk.f32.vlgmr.msra.gmra.mxu1 %vm167_vm1, %v636_v25 }
 0x6df   :  { %v1025_v35 = vadd.f32 %v1877_v31, %v1024_v34  ;;  %1004 = vmatpush.msra.mxu1 %v981_v43  ;;  %v978_v34 = vld [vmem:[%s2808_s5] sm:$0xff] }
 0x6e1   :  { %v2340_v36 = vsel %vm1026_vm2, %v1877_v31, %v1025_v35 }
 0x6e6   :  { %1789 = vmatmul.msk.f32.vlgmr.msrb.gmra.mxu1 %vm167_vm1, %v808_v29 }
 0x705   :  { %v1274_v38 = vpop.xlane.xlu1 %1273 }
 0x706   :  { %v2343_v40 = vmul.f32 %v1274_v38, %v2340_v36 }
 0x708   :  { %v2347_v42 = vsub.f32 %v2321_v41, %v2343_v40 }
 0x70a   :  { %v1284_v37 = vmul.f32 %v2347_v42, %v2347_v42 }
 0x70c   :  { %1295 = vrot.lane.b32.xlu1 %v1284_v37, %s2032_s6 }
 0x74c   :  { %v793_v45 = vpop.xlane.xlu0 %792 }
 0x74d   :  { %1878 = vrcp.f32 %v793_v45  ;;  %v820_v10 = vand.u32 2147483648, %v793_v45  ;;  %v818_v23 = vand.u32 2147483647, %v793_v45  ;;  %vm814_vm4 = vweird.f32 %v793_v45 }
 0x74e   :  { %1880 = vrcp.f32 %v2034_v7 }
 0x74f   :  { %v821_v50 = vor.u32 1.1754944e-38, %v820_v10  ;;  %vm819_vm6 = vcmp.eq.f32.partialorder %v818_v23, 8.507059e+37 }
 0x753   :  { %v1879_v46 = vpop.eup %1878 }
 0x754   :  { %v810_v47 = vmul.f32 %v1879_v46, %v793_v45  ;;  %vm815_vm3 = vweird.f32 %v1879_v46  ;;  %v1881_v8 = vpop.eup %1880 }
 0x755   :  { %vm816_vm5 = vmor %vm814_vm4, %vm815_vm3  ;;  %v924_v39 = vmul.f32 32.0, %v1881_v8  ;;  %vm928_vm7 = vweird.f32 %v1881_v8 }
 0x756   :  { %v811_v48 = vsub.f32 1.0, %v810_v47 }
 0x757   :  { %v925_v9 = vsub.f32 1.0, %v924_v39 }
 0x758   :  { %v812_v19 = vmul.f32 %v1879_v46, %v811_v48 }
 0x75a   :  { %v813_v49 = vadd.f32 %v1879_v46, %v812_v19 }
 0x75b   :  { %v686_v51 = vpop.f32.mrf.mxu1 }
 0x75c   :  { %v817_v53 = vsel %vm816_vm5, %v1879_v46, %v813_v49  ;;  %1784 = vmatmul.msk.f32.gmra.mxu2 %vm167_vm1, %v686_v51 }
 0x75d   :  { %v822_v54 = vsel %vm819_vm6, %v821_v50, %v817_v53  ;;  %v1831_v53 = vld [vmem:[%s2809_s8] ss:$0 sm:$0xff] }
 0x75e   :  { %v823_v55 = vmul.f32 %v1875_v11, %v822_v54  ;;  %v926_v11 = vmul.f32 %v1881_v8, %v925_v9 }
 0x760   :  { %1790 = vmatmul.msk.f32.vlgmr.msra.gmra.mxu3 %vm167_vm1, %v823_v55  ;;  %v927_v14 = vadd.f32 %v1881_v8, %v926_v11 }
 0x762   :  { %v2366_v18 = vsel %vm928_vm7, %v1881_v8, %v927_v14 }
 0x763   :  { %v847_v56 = vpop.f32.mrf.mxu1 }
 0x764   :  { %1791 = vmatmul.msk.f32.vlgmr.msra.gmra.mxu0 %vm167_vm1, %v847_v56 }
 0x7df   :  { %v715_v12 = vpop.f32.mrf.mxu2 }
 0x7e0   :  { %v719_v17 = vadd.f32 %v715_v12, %v531_v16 }
 0x7e1   :  { %v899_v63 = vpop.f32.mrf.mxu0 }
 0x7e2   :  { %v905_v0 = vadd.f32 %v899_v63, %v718_v61 }
 0x7e3   :  { %v873_v1 = vpop.f32.mrf.mxu3 }
 0x7e4   :  { %v911_v2 = vadd.f32 %v1830_v62, %v905_v0  ;;  %1792 = vmatmul.msk.f32.gmra.mxu0 %vm167_vm1, %v873_v1 }
 0x7e6   :  { %v913_v3 = vadd.f32 %v911_v2, %v2181_v4 }
 0x7e8   :  { %v917_v6 = vsel %vm107_vm0, %v913_v3, 0.0 }
 0x7e9   :  { %918 = vadd.xlane.f32.xlu0 %v917_v6 }
 0x85c   :  { %v919_v20 = vpop.xlane.xlu0 %918 }
 0x85d   :  { %v930_v24 = vmul.f32 %v2366_v18, %v919_v20 }
 0x85f   :  { %v932_v27 = vsub.f32 %v913_v3, %v930_v24 }
 0x861   :  { %v902_v22 = vpop.f32.mrf.mxu0  ;;  %v934_v29 = vmul.f32 %v932_v27, %v932_v27 }
 0x862   :  { %v906_v4 = vadd.f32 %v902_v22, %v719_v17 }
 0x863   :  { %v936_v30 = vsel %vm107_vm0, %v934_v29, 0.0  ;;  %v1835_v29 = vld [vmem:[%s2781_s17] ss:$0 sm:$0xff] }
 0x864   :  { %v912_v25 = vadd.f32 %v1830_v62, %v906_v4  ;;  %v1296_v4 = vpop.permute.xlu1 %1295 }
 0x866   :  { %v914_v26 = vadd.f32 %v912_v25, %v2188_v5  ;;  %v980_v5 = vld [vmem:[%s2808_s5 + $0x10] sm:$0xff]  ;;  %s2810_s5 = sld [smem:[#allocation15_spill]]  ;;  %v1834_v25 = vld [vmem:[%s2780_s16] ss:$0 sm:$0xff] }
 0x867   :  { %1005 = vmatpush.msra.mxu1 %v980_v5 }
 0x868   :  { %v920_v28 = vsel %vm107_vm0, %v914_v26, 0.0 }
 0x869   :  { %921 = vadd.xlane.f32.xlu0 %v920_v28  ;;  %1006 = vmatpush.msra.mxu1 %v979_v33 }
 0x86b   :  { %1007 = vmatpush.msra.mxu1 %v978_v34 }
 0x86c   :  { %v1832_v56 = vld [vmem:[%s2810_s5] ss:$0 sm:$0xff] }
 0x871   :  { %937 = vadd.xlane.f32.xlu0 %v936_v30 }
 0x885   :  { %1261 = vrot.lane.b32.xlu0 %v2235_v21, %s2032_s6 }
 0x8dc   :  { %v922_v31 = vpop.xlane.xlu0 %921 }
 0x8dd   :  { %v931_v32 = vmul.f32 %v2366_v18, %v922_v31 }
 0x8df   :  { %v933_v35 = vsub.f32 %v914_v26, %v931_v32 }
 0x8e1   :  { %v935_v38 = vmul.f32 %v933_v35, %v933_v35 }
 0x8e3   :  { %v939_v37 = vsel %vm107_vm0, %v935_v38, 0.0 }
 0x8e4   :  { %940 = vadd.xlane.f32.xlu2 %v939_v37  ;;  %v938_v44 = vpop.xlane.xlu0 %937 }
 0x8e5   :  { %v942_v45 = vmul.f32 %v938_v44, %v2366_v18 }
 0x8e7   :  { %v944_v46 = vadd.f32 1e-05, %v942_v45 }
 0x8e9   :  { %1882 = vrsqrt.f32 %v944_v46  ;;  %vm952_vm8 = vweird.f32 %v944_v46 }
 0x8ef   :  { %v1883_v47 = vpop.eup %1882 }
 0x8f0   :  { %v947_v48 = vmul.f32 %v1883_v47, %v944_v46  ;;  %vm953_vm1 = vweird.f32 %v1883_v47 }
 0x8f1   :  { %vm954_vm9 = vmor %vm952_vm8, %vm953_vm1 }
 0x8f2   :  { %v948_v10 = vmul.f32 %v1883_v47, %v947_v48 }
 0x8f4   :  { %v949_v19 = vmul.f32 0.5, %v948_v10 }
 0x8f6   :  { %v950_v23 = vsub.f32 1.5, %v949_v19 }
 0x8f7   :  { %v1262_v49 = vpop.permute.xlu0 %1261 }
 0x8f8   :  { %v951_v50 = vmul.f32 %v1883_v47, %v950_v23  ;;  %v1267_v51 = vsel %vm107_vm0, %v2333_v52, %v1262_v49  ;;  %v2403_v52 = vsub.f32 %v2219_v15, %v2343_v40 }
 0x8f9   :  { %1271 = vadd.xlane.f32.xlu0 %v1267_v51 }
 0x8fa   :  { %v955_v54 = vsel %vm954_vm9, %v1883_v47, %v951_v50  ;;  %v1283_v59 = vmul.f32 %v2403_v52, %v2403_v52 }
 0x8fb   :  { %v966_v55 = vmul.f32 %v955_v54, %v932_v27 }
 0x8fd   :  { %v971_v57 = vmul.f32 %v1831_v53, %v966_v55 }
 0x8ff   :  { %v2397_v58 = vadd.f32 %v1832_v56, %v971_v57 }
 0x901   :  { %1793 = vmatmul.msk.f32.vlgmr.msra.gmra.mxu1 %vm107_vm0, %v2397_v58 }
 0x90d   :  { %1293 = vrot.lane.b32.xlu0 %v1283_v59, %s2032_s6 }
 0x957   :  { %v941_v60 = vpop.xlane.xlu2 %940 }
 0x958   :  { %v943_v61 = vmul.f32 %v941_v60, %v2366_v18 }
 0x95a   :  { %v945_v62 = vadd.f32 1e-05, %v943_v61 }
 0x95c   :  { %1884 = vrsqrt.f32 %v945_v62  ;;  %vm962_vm11 = vweird.f32 %v945_v62 }
 0x962   :  { %v1885_v63 = vpop.eup %1884 }
 0x963   :  { %v957_v0 = vmul.f32 %v1885_v63, %v945_v62  ;;  %vm963_vm10 = vweird.f32 %v1885_v63 }
 0x964   :  { %vm964_vm12 = vmor %vm962_vm11, %vm963_vm10 }
 0x965   :  { %v958_v1 = vmul.f32 %v1885_v63, %v957_v0 }
 0x967   :  { %v959_v2 = vmul.f32 0.5, %v958_v1 }
 0x969   :  { %v960_v3 = vsub.f32 1.5, %v959_v2 }
 0x96b   :  { %v961_v6 = vmul.f32 %v1885_v63, %v960_v3 }
 0x96c   :  { %v1272_v15 = vpop.xlane.xlu0 %1271 }
 0x96d   :  { %v965_v40 = vsel %vm964_vm12, %v1885_v63, %v961_v6  ;;  %v1275_v7 = vmul.f32 %v1272_v15, %v2340_v36 }
 0x96e   :  { %v967_v8 = vmul.f32 %v965_v40, %v933_v35 }
 0x96f   :  { %v2411_v39 = vsub.f32 %v2212_v13, %v1275_v7  ;;  %v2421_v14 = vsub.f32 %v2235_v21, %v1275_v7  ;;  %v1833_v13 = vld [vmem:[%s2773_s9] ss:$0 sm:$0xff]  ;;  %s2036_s9 = smov 128  }
 0x970   :  { %v972_v9 = vmul.f32 %v1831_v53, %v967_v8 }
 0x971   :  { %v1281_v11 = vmul.f32 %v2411_v39, %v2411_v39  ;;  %v1282_v16 = vmul.f32 %v2421_v14, %v2421_v14 }
 0x972   :  { %v2415_v12 = vadd.f32 %v1832_v56, %v972_v9 }
 0x973   :  { %1289 = vrot.lane.b32.xlu2 %v1281_v11, %s2032_s6 }
 0x974   :  { %1794 = vmatmul.msk.f32.gmra.mxu1 %vm107_vm0, %v2415_v12 }
 0x97b   :  { %1291 = vrot.lane.b32.xlu2 %v1282_v16, %s2032_s6 }
 0x97e   :  { %v1009_v17 = vpop.f32.mrf.mxu1 }
 0x97f   :  { %v1010_v20 = vadd.f32 %v1833_v13, %v1009_v17  ;;  %v1294_v22 = vpop.permute.xlu0 %1293 }
 0x980   :  { %v1298_v24 = vsel %vm107_vm0, %v1294_v22, %v1296_v4 }
 0x9a4   :  { %1017 = vadd.xlane.f32.xlu2 %v1010_v20 }
 0x9ac   :  { %1303 = vadd.xlane.f32.xlu2 %v1298_v24 }
 0x9c4   :  { %1335 = vrot.lane.b32.xlu2 %v1834_v25, %s2022_s28 }
 0x9cd   :  { %v1290_v26 = vpop.permute.xlu2 %1289 }
 0x9d5   :  { %v1292_v27 = vpop.permute.xlu2 %1291 }
 0x9d6   :  { %v1297_v28 = vsel %vm107_vm0, %v1290_v26, %v1292_v27 }
 0x9d7   :  { %1301 = vadd.xlane.f32.xlu0 %v1297_v28 }
 0x9eb   :  { %1344 = vrot.lane.b32.xlu0 %v1835_v29, %s2022_s28 }
 0x9f1   :  { %v1012_v30 = vpop.f32.mrf.mxu1 }
 0x9f2   :  { %v2439_v43 = vadd.f32 %v1833_v13, %v1012_v30 }
 0x9f4   :  { %1019 = vadd.xlane.f32.xlu1 %v2439_v43 }
 0xa17   :  { %v1018_v31 = vpop.xlane.xlu2 %1017 }
 0xa18   :  { %v1028_v5 = vmul.f32 %v2340_v36, %v1018_v31 }
 0xa1a   :  { %v2443_v32 = vsub.f32 %v1010_v20, %v1028_v5 }
 0xa1c   :  { %v1032_v33 = vmul.f32 %v2443_v32, %v2443_v32 }
 0xa1e   :  { %1034 = vadd.xlane.f32.xlu1 %v1032_v33 }
 0xa1f   :  { %v1304_v34 = vpop.xlane.xlu2 %1303 }
 0xa20   :  { %v1306_v35 = vmul.f32 %v1304_v34, %v2340_v36 }
 0xa22   :  { %v1308_v38 = vadd.f32 1e-05, %v1306_v35 }
 0xa24   :  { %1886 = vrsqrt.f32 %v1308_v38  ;;  %vm1325_vm14 = vweird.f32 %v1308_v38 }
 0xa27   :  { %v1336_v56 = vpop.permute.xlu2 %1335 }
 0xa2a   :  { %v1887_v37 = vpop.eup %1886 }
 0xa2b   :  { %v1320_v44 = vmul.f32 %v1887_v37, %v1308_v38  ;;  %vm1326_vm13 = vweird.f32 %v1887_v37 }
 0xa2c   :  { %vm1327_vm15 = vmor %vm1325_vm14, %vm1326_vm13 }
 0xa2d   :  { %v1321_v45 = vmul.f32 %v1887_v37, %v1320_v44 }
 0xa2f   :  { %v1322_v46 = vmul.f32 0.5, %v1321_v45 }
 0xa31   :  { %v1323_v10 = vsub.f32 1.5, %v1322_v46 }
 0xa33   :  { %v1324_v23 = vmul.f32 %v1887_v37, %v1323_v10 }
 0xa35   :  { %v1328_v50 = vsel %vm1327_vm15, %v1887_v37, %v1324_v23 }
 0xa36   :  { %v1331_v53 = vmul.f32 %v1328_v50, %v2403_v52  ;;  %v1332_v54 = vmul.f32 %v1328_v50, %v2347_v42 }
 0xa38   :  { %v1340_v59 = vmul.f32 %v1336_v56, %v1331_v53  ;;  %v1341_v60 = vmul.f32 %v1336_v56, %v1332_v54 }
 0xa4a   :  { %v1302_v47 = vpop.xlane.xlu0 %1301 }
 0xa4b   :  { %v1305_v48 = vmul.f32 %v1302_v47, %v2340_v36 }
 0xa4d   :  { %v1307_v19 = vadd.f32 1e-05, %v1305_v48 }
 0xa4f   :  { %1888 = vrsqrt.f32 %v1307_v19  ;;  %vm1315_vm3 = vweird.f32 %v1307_v19 }
 0xa55   :  { %v1889_v49 = vpop.eup %1888 }
 0xa56   :  { %v1310_v51 = vmul.f32 %v1889_v49, %v1307_v19  ;;  %vm1316_vm2 = vweird.f32 %v1889_v49 }
 0xa57   :  { %vm1317_vm4 = vmor %vm1315_vm3, %vm1316_vm2 }
 0xa58   :  { %v1311_v55 = vmul.f32 %v1889_v49, %v1310_v51 }
 0xa5a   :  { %v1312_v57 = vmul.f32 0.5, %v1311_v55 }
 0xa5c   :  { %v1313_v61 = vsub.f32 1.5, %v1312_v57 }
 0xa5d   :  { %v1345_v62 = vpop.permute.xlu0 %1344 }
 0xa5e   :  { %v1314_v63 = vmul.f32 %v1889_v49, %v1313_v61  ;;  %v2451_v0 = vadd.f32 %v1345_v62, %v1340_v59  ;;  %v2453_v1 = vadd.f32 %v1345_v62, %v1341_v60 }
 0xa60   :  { %v1318_v2 = vsel %vm1317_vm4, %v1889_v49, %v1314_v63  ;;  %v1365_v52 = vand.u32 2147483647, %v2451_v0  ;;  %v1366_v6 = vand.u32 2147483647, %v2453_v1  ;;  %v1353_v50 = vmax.f32 %v2451_v0, 0.0 }
 0xa61   :  { %v1329_v42 = vmul.f32 %v1318_v2, %v2411_v39  ;;  %v1330_v3 = vmul.f32 %v1318_v2, %v2421_v14  ;;  %v1354_v55 = vmax.f32 %v2453_v1, 0.0  ;;  %vm1357_vm7 = vcmp.ne.f32.partialorder %v2451_v0, %v2451_v0 }
 0xa62   :  { %v1369_v15 = vsub.f32 0.0, %v1365_v52  ;;  %v1370_v8 = vsub.f32 0.0, %v1366_v6  ;;  %vm1358_vm1 = vcmp.ne.f32.partialorder %v2453_v1, %v2453_v1  ;;  %vm1591_vm4 = vcmp.ne.f32.partialorder %v2321_v41, %v2321_v41 }
 0xa63   :  { %v1338_v40 = vmul.f32 %v1336_v56, %v1329_v42  ;;  %v1339_v7 = vmul.f32 %v1336_v56, %v1330_v3 }
 0xa64   :  { %v1375_v9 = vmul.f32 1.442695, %v1369_v15  ;;  %v1377_v13 = vmul.f32 1.442695, %v1370_v8 }
 0xa65   :  { %v2459_v11 = vadd.f32 %v1345_v62, %v1338_v40  ;;  %v2461_v16 = vadd.f32 %v1345_v62, %v1339_v7 }
 0xa66   :  { %1890 = vpow2.f32 %v1375_v9 }
 0xa67   :  { %v1363_v17 = vand.u32 2147483647, %v2459_v11  ;;  %v1364_v20 = vand.u32 2147483647, %v2461_v16  ;;  %v1020_v39 = vpop.xlane.xlu1 %1019  ;;  %1892 = vpow2.f32 %v1377_v13  ;;  %v1351_v3 = vmax.f32 %v2459_v11, 0.0 }
 0xa68   :  { %v1029_v14 = vmul.f32 %v2340_v36, %v1020_v39  ;;  %v1352_v9 = vmax.f32 %v2461_v16, 0.0  ;;  %vm1355_vm10 = vcmp.ne.f32.partialorder %v2459_v11, %v2459_v11  ;;  %vm1356_vm11 = vcmp.ne.f32.partialorder %v2461_v16, %v2461_v16 }
 0xa69   :  { %v1367_v22 = vsub.f32 0.0, %v1363_v17  ;;  %v1368_v4 = vsub.f32 0.0, %v1364_v20 }
 0xa6a   :  { %v2467_v24 = vsub.f32 %v2439_v43, %v1029_v14 }
 0xa6b   :  { %v1371_v25 = vmul.f32 1.442695, %v1367_v22  ;;  %v1373_v26 = vmul.f32 1.442695, %v1368_v4 }
 0xa6c   :  { %v1891_v27 = vpop.eup %1890  ;;  %v1033_v28 = vmul.f32 %v2467_v24, %v2467_v24 }
 0xa6d   :  { %1894 = vpow2.f32 %v1371_v25  ;;  %v1397_v29 = vadd.f32 1.0, %v1891_v27  ;;  %v1893_v30 = vpop.eup %1892  ;;  %v1400_v31 = vmul.f32 -0.5, %v1891_v27  ;;  %v1403_v43 = vand.u32 2147483647, %v1891_v27 }
 0xa6e   :  { %1896 = vpow2.f32 %v1373_v26  ;;  %1036 = vadd.xlane.f32.xlu1 %v1033_v28  ;;  %v1406_v5 = vadd.f32 1.0, %v1893_v30  ;;  %v1409_v33 = vmul.f32 -0.5, %v1893_v30  ;;  %v1412_v46 = vand.u32 2147483647, %v1893_v30  ;;  %v2492_v28 = vld [vmem:[%s2804_s26] sm:$0xff] }
 0xa6f   :  { %1898 = vlog2.f32 %v1397_v29  ;;  %v1401_v34 = vadd.f32 1.0, %v1400_v31  ;;  %vm1404_vm5 = vcmp.lt.f32.partialorder %v1403_v43, 0.0004427343  ;;  %v1129_v43 = vld [vmem:[%s2776_s12 + $0x78] sm:$0xff] }
 0xa70   :  { %1900 = vlog2.f32 %v1406_v5  ;;  %v1410_v37 = vadd.f32 1.0, %v1409_v33  ;;  %vm1413_vm6 = vcmp.lt.f32.partialorder %v1412_v46, 0.0004427343  ;;  %1134 = vmatpush.msra.mxu2 %v1129_v43  ;;  %v1125_v46 = vld [vmem:[%s2776_s12 + $0x58] sm:$0xff] }
 0xa71   :  { %v1402_v19 = vmul.f32 %v1891_v27, %v1401_v34 }
 0xa72   :  { %v1411_v54 = vmul.f32 %v1893_v30, %v1410_v37  ;;  %v1126_v37 = vld [vmem:[%s2776_s12 + $0x60] sm:$0xff] }
 0xa73   :  { %v1895_v35 = vpop.eup %1894 }
 0xa74   :  { %v1897_v38 = vpop.eup %1896  ;;  %v1379_v44 = vadd.f32 1.0, %v1895_v35  ;;  %v1382_v47 = vmul.f32 -0.5, %v1895_v35  ;;  %v1385_v60 = vand.u32 2147483647, %v1895_v35 }
 0xa75   :  { %v1899_v45 = vpop.eup %1898  ;;  %v1388_v48 = vadd.f32 1.0, %v1897_v38  ;;  %v1391_v23 = vmul.f32 -0.5, %v1897_v38  ;;  %v1394_v2 = vand.u32 2147483647, %v1897_v38 }
 0xa76   :  { %v1399_v10 = vmul.f32 0.6931472, %v1899_v45  ;;  %1902 = vlog2.f32 %v1379_v44  ;;  %v1901_v49 = vpop.eup %1900  ;;  %v1383_v57 = vadd.f32 1.0, %v1382_v47  ;;  %vm1386_vm8 = vcmp.lt.f32.partialorder %v1385_v60, 0.0004427343  ;;  %v1446_v44 = vld [vmem:[%s2782_s18 + $0x78] sm:$0xff] }
 0xa77   :  { %1904 = vlog2.f32 %v1388_v48  ;;  %v1408_v53 = vmul.f32 0.6931472, %v1901_v49  ;;  %v1392_v61 = vadd.f32 1.0, %v1391_v23  ;;  %vm1395_vm9 = vcmp.lt.f32.partialorder %v1394_v2, 0.0004427343  ;;  %1467 = vmatpush.msrb.mxu3 %v1446_v44  ;;  %v1445_v45 = vld [vmem:[%s2782_s18 + $0x70] sm:$0xff] }
 0xa78   :  { %v1405_v51 = vsel %vm1404_vm5, %v1402_v19, %v1399_v10  ;;  %v1384_v40 = vmul.f32 %v1895_v35, %v1383_v57  ;;  %v1444_v47 = vld [vmem:[%s2782_s18 + $0x68] sm:$0xff]  ;;  %v1124_v10 = vld [vmem:[%s2776_s12 + $0x50] sm:$0xff]  ;;  %v2550_v57 = vld [vmem:[%s2774_s10] ss:$0 sm:$0xff] }
 0xa79   :  { %v1417_v56 = vadd.f32 %v1405_v51, %v1353_v50  ;;  %v1414_v59 = vsel %vm1413_vm6, %v1411_v54, %v1408_v53  ;;  %v1393_v8 = vmul.f32 %v1897_v38, %v1392_v61  ;;  %v1128_v38 = vld [vmem:[%s2776_s12 + $0x70] sm:$0xff]  ;;  %1468 = vmatpush.msrb.mxu3 %v1445_v45  ;;  %v1123_v23 = vld [vmem:[%s2776_s12 + $0x48] sm:$0xff]  ;;  %v1122_v50 = vld [vmem:[%s2776_s12 + $0x40] sm:$0xff]  ;;  %vm1590_vm6 = vcmp.ne.f32.partialorder %v2235_v21, %v2235_v21 }
 0xa7a   :  { %v1418_v62 = vadd.f32 %v1414_v59, %v1354_v55  ;;  %1135 = vmatpush.msra.mxu2 %v1128_v38  ;;  %v1121_v53 = vld [vmem:[%s2776_s12 + $0x38] sm:$0xff]  ;;  %v1120_v55 = vld [vmem:[%s2776_s12 + $0x30] sm:$0xff]  ;;  %v1119_v59 = vld [vmem:[%s2776_s12 + $0x28] sm:$0xff] }
 0xa7b   :  { %v1421_v63 = vsel %vm1357_vm7, %v2451_v0, %v1417_v56  ;;  %1469 = vmatpush.msrb.mxu3 %v1444_v47  ;;  %v2558_v61 = vld [vmem:[%s2775_s11] ss:$0 sm:$0xff]  ;;  %v1434_v45 = vld [vmem:[%s2782_s18 + $0x18] sm:$0xff] }
 0xa7c   :  { %v1903_v52 = vpop.eup %1902  ;;  %1906 = vtanh.f32 %v1421_v63  ;;  %v1422_v6 = vsel %vm1358_vm1, %v2453_v1, %v1418_v62  ;;  %v1118_v63 = vld [vmem:[%s2776_s12 + $0x20] sm:$0xff] }
 0xa7d   :  { %v1905_v42 = vpop.eup %1904  ;;  %v1381_v15 = vmul.f32 0.6931472, %v1903_v52  ;;  %1908 = vtanh.f32 %v1422_v6  ;;  %v1117_v52 = vld [vmem:[%s2776_s12 + $0x18] sm:$0xff]  ;;  %v1115_v6 = vld [vmem:[%s2776_s12 + $0x8] sm:$0xff]  ;;  %v1435_v38 = vld [vmem:[%s2782_s18 + $0x20] sm:$0xff] }
 0xa7e   :  { %v1390_v7 = vmul.f32 0.6931472, %v1905_v42 }
 0xa7f   :  { %v1387_v13 = vsel %vm1386_vm8, %v1384_v40, %v1381_v15  ;;  %v1114_v40 = vld [vmem:[%s2776_s12] sm:$0xff] }
 0xa80   :  { %v1396_v17 = vsel %vm1395_vm9, %v1393_v8, %v1390_v7  ;;  %v1415_v20 = vadd.f32 %v1387_v13, %v1351_v3  ;;  %v1116_v3 = vld [vmem:[%s2776_s12 + $0x10] sm:$0xff]  ;;  %v1443_v8 = vld [vmem:[%s2782_s18 + $0x60] sm:$0xff] }
 0xa81   :  { %v1416_v39 = vadd.f32 %v1396_v17, %v1352_v9  ;;  %v1442_v9 = vld [vmem:[%s2782_s18 + $0x58] sm:$0xff]  ;;  %1470 = vmatpush.msrb.mxu3 %v1443_v8  ;;  %v1441_v13 = vld [vmem:[%s2782_s18 + $0x50] sm:$0xff]  ;;  %v1595_v17 = vand.u32 2147483647, %v2321_v41 }
 0xa82   :  { %v1907_v14 = vpop.eup %1906  ;;  %v1419_v22 = vsel %vm1355_vm10, %v2459_v11, %v1415_v20  ;;  %v1440_v20 = vld [vmem:[%s2782_s18 + $0x48] sm:$0xff] }
 0xa83   :  { %v1429_v4 = vmul.f32 %v1907_v14, %v2451_v0  ;;  %v1420_v25 = vsel %vm1356_vm11, %v2461_v16, %v1416_v39  ;;  %1910 = vtanh.f32 %v1419_v22  ;;  %v1909_v26 = vpop.eup %1908  ;;  %1471 = vmatpush.msrb.mxu3 %v1442_v9  ;;  %v1439_v39 = vld [vmem:[%s2782_s18 + $0x40] sm:$0xff]  ;;  %v1597_v22 = vsub.f32 0.0, %v1595_v17 }
 0xa84   :  { %1912 = vtanh.f32 %v1420_v25  ;;  %v1430_v27 = vmul.f32 %v1909_v26, %v2453_v1  ;;  %v1438_v25 = vld [vmem:[%s2782_s18 + $0x38] sm:$0xff]  ;;  %v1588_v17 = vmax.f32 %v2235_v21, 0.0 }
 0xa85   :  { %1472 = vmatpush.msrb.mxu3 %v1441_v13 }
 0xa86   :  { %v1825_v29 = vpack.i.bf16 %v1430_v27, %v1429_v4  ;;  %v1437_v27 = vld [vmem:[%s2782_s18 + $0x30] sm:$0xff] }
 0xa87   :  { %1628 = vrot.lane.b32.xlu1 %v2492_v28, %s2022_s28  ;;  %1473 = vmatpush.msrb.mxu3 %v1440_v20 }
 0xa88   :  { %1826 = vrot.lane.b32.xlu0 %v1825_v29, %s2032_s6  ;;  %v1594_v29 = vand.u32 2147483647, %v2235_v21 }
 0xa89   :  { %v1911_v30 = vpop.eup %1910  ;;  %1474 = vmatpush.msrb.mxu3 %v1439_v39 }
 0xa8a   :  { %v1913_v0 = vpop.eup %1912  ;;  %v1427_v31 = vmul.f32 %v1911_v30, %v2459_v11  ;;  %v1127_v11 = vld [vmem:[%s2776_s12 + $0x68] sm:$0xff]  ;;  %v1600_v30 = vmul.f32 1.442695, %v1597_v22 }
 0xa8b   :  { %v1428_v5 = vmul.f32 %v1913_v0, %v2461_v16  ;;  %v2513_v16 = vld [vmem:[%s2804_s26 + $0x8] sm:$0xff]  ;;  %1136 = vmatpush.msra.mxu2 %v1127_v11  ;;  %1475 = vmatpush.msrb.mxu3 %v1438_v25 }
 0xa8c   :  { %v1436_v0 = vld [vmem:[%s2782_s18 + $0x28] sm:$0xff] }
 0xa8d   :  { %v1820_v33 = vpack.i.bf16 %v1428_v5, %v1427_v31  ;;  %1137 = vmatpush.msra.mxu2 %v1126_v37  ;;  %1476 = vmatpush.msrb.mxu3 %v1437_v27 }
 0xa8f   :  { %1821 = vrot.lane.b32.xlu2 %v1820_v33, %s2032_s6  ;;  %1138 = vmatpush.msra.mxu2 %v1125_v46 }
 0xa90   :  { %1477 = vmatpush.msrb.mxu3 %v1436_v0 }
 0xa91   :  { %v1035_v1 = vpop.xlane.xlu1 %1034  ;;  %1139 = vmatpush.msra.mxu2 %v1124_v10  ;;  %v1432_v10 = vld [vmem:[%s2782_s18 + $0x8] sm:$0xff] }
 0xa92   :  { %v1038_v34 = vmul.f32 %v1035_v1, %v2340_v36  ;;  %v1596_v1 = vsub.f32 0.0, %v1594_v29  ;;  %1478 = vmatpush.msrb.mxu3 %v1435_v38 }
 0xa93   :  { %1140 = vmatpush.msra.mxu2 %v1123_v23  ;;  %v1431_v23 = vld [vmem:[%s2782_s18] sm:$0xff] }
 0xa94   :  { %v1040_v35 = vadd.f32 1e-05, %v1038_v34  ;;  %v1598_v37 = vmul.f32 1.442695, %v1596_v1  ;;  %1479 = vmatpush.msrb.mxu3 %v1434_v45 }
 0xa95   :  { %1141 = vmatpush.msra.mxu2 %v1122_v50 }
 0xa96   :  { %1914 = vrsqrt.f32 %v1040_v35  ;;  %vm1048_vm13 = vweird.f32 %v1040_v35 }
 0xa97   :  { %1630 = vrot.lane.b32.xlu2 %v2513_v16, %s2022_s28  ;;  %1142 = vmatpush.msra.mxu2 %v1121_v53 }
 0xa99   :  { %1143 = vmatpush.msra.mxu2 %v1120_v55 }
 0xa9b   :  { %1144 = vmatpush.msra.mxu2 %v1119_v59 }
 0xa9c   :  { %v1915_v48 = vpop.eup %1914 }
 0xa9d   :  { %v1043_v19 = vmul.f32 %v1915_v48, %v1040_v35  ;;  %vm1049_vm12 = vweird.f32 %v1915_v48  ;;  %1145 = vmatpush.msra.mxu2 %v1118_v63 }
 0xa9e   :  { %vm1050_vm14 = vmor %vm1048_vm13, %vm1049_vm12 }
 0xa9f   :  { %v1044_v49 = vmul.f32 %v1915_v48, %v1043_v19  ;;  %1146 = vmatpush.msra.mxu2 %v1117_v52 }
 0xaa1   :  { %v1045_v51 = vmul.f32 0.5, %v1044_v49  ;;  %1147 = vmatpush.msra.mxu2 %v1116_v3 }
 0xaa3   :  { %v1046_v54 = vsub.f32 1.5, %v1045_v51  ;;  %1148 = vmatpush.msra.mxu2 %v1115_v6 }
 0xaa5   :  { %v1047_v56 = vmul.f32 %v1915_v48, %v1046_v54  ;;  %1149 = vmatpush.msra.mxu2 %v1114_v40 }
 0xaa7   :  { %v1051_v60 = vsel %vm1050_vm14, %v1915_v48, %v1047_v56  ;;  %v1433_v48 = vld [vmem:[%s2782_s18 + $0x10] sm:$0xff] }
 0xaa8   :  { %v1062_v62 = vmul.f32 %v1051_v60, %v2443_v32  ;;  %1480 = vmatpush.msrb.mxu3 %v1433_v48 }
 0xaaa   :  { %v1067_v2 = vmul.f32 %v2550_v57, %v1062_v62  ;;  %1481 = vmatpush.msrb.mxu3 %v1432_v10 }
 0xaac   :  { %v2569_v42 = vadd.f32 %v2558_v61, %v1067_v2  ;;  %1482 = vmatpush.msrb.mxu3 %v1431_v23  ;;  %v1589_v2 = vmax.f32 %v2321_v41, 0.0 }
 0xaae   :  { %v1080_v32 = vand.u32 2147483647, %v2569_v42  ;;  %v1074_v43 = vmax.f32 %v2569_v42, 0.0  ;;  %vm1076_vm2 = vcmp.ne.f32.partialorder %v2569_v42, %v2569_v42 }
 0xab0   :  { %v1082_v15 = vsub.f32 0.0, %v1080_v32 }
 0xab2   :  { %v1084_v7 = vmul.f32 1.442695, %v1082_v15 }
 0xab4   :  { %1916 = vpow2.f32 %v1084_v7 }
 0xaba   :  { %v1917_v14 = vpop.eup %1916 }
 0xabb   :  { %v1088_v4 = vadd.f32 1.0, %v1917_v14  ;;  %v1091_v26 = vmul.f32 -0.5, %v1917_v14  ;;  %v1094_v5 = vand.u32 2147483647, %v1917_v14 }
 0xabd   :  { %1918 = vlog2.f32 %v1088_v4  ;;  %v1092_v31 = vadd.f32 1.0, %v1091_v26  ;;  %vm1095_vm15 = vcmp.lt.f32.partialorder %v1094_v5, 0.0004427343 }
 0xabe   :  { %1920 = vpow2.f32 %v1600_v30 }
 0xabf   :  { %v1093_v35 = vmul.f32 %v1917_v14, %v1092_v31 }
 0xac3   :  { %v1919_v33 = vpop.eup %1918 }
 0xac4   :  { %v1090_v34 = vmul.f32 0.6931472, %v1919_v33  ;;  %v1921_v46 = vpop.eup %1920 }
 0xac5   :  { %v1611_v19 = vadd.f32 1.0, %v1921_v46  ;;  %v1614_v53 = vmul.f32 -0.5, %v1921_v46  ;;  %v1617_v59 = vand.u32 2147483647, %v1921_v46 }
 0xac6   :  { %v1096_v11 = vsel %vm1095_vm15, %v1093_v35, %v1090_v34 }
 0xac7   :  { %v1106_v44 = vadd.f32 %v1096_v11, %v1074_v43  ;;  %v1615_v55 = vadd.f32 1.0, %v1614_v53  ;;  %vm1618_vm3 = vcmp.lt.f32.partialorder %v1617_v59, 0.0004427343 }
 0xac9   :  { %v1108_v47 = vsel %vm1076_vm2, %v2569_v42, %v1106_v44  ;;  %v1616_v62 = vmul.f32 %v1921_v46, %v1615_v55 }
 0xaca   :  { %1922 = vtanh.f32 %v1108_v47 }
 0xacb   :  { %1924 = vpow2.f32 %v1598_v37 }
 0xacc   :  { %1926 = vlog2.f32 %v1611_v19 }
 0xad0   :  { %v1923_v49 = vpop.eup %1922 }
 0xad1   :  { %v1925_v50 = vpop.eup %1924  ;;  %v1112_v51 = vmul.f32 %v1923_v49, %v2569_v42 }
 0xad2   :  { %v1602_v54 = vadd.f32 1.0, %v1925_v50  ;;  %v1927_v56 = vpop.eup %1926  ;;  %v1605_v63 = vmul.f32 -0.5, %v1925_v50  ;;  %v1608_v6 = vand.u32 2147483647, %v1925_v50 }
 0xad3   :  { %1150 = vmatmul.f32.vlgmr.msra.gmra.mxu2 %v1112_v51  ;;  %v1613_v60 = vmul.f32 0.6931472, %v1927_v56 }
 0xad4   :  { %1928 = vlog2.f32 %v1602_v54  ;;  %v1606_v3 = vadd.f32 1.0, %v1605_v63  ;;  %vm1609_vm5 = vcmp.lt.f32.partialorder %v1608_v6, 0.0004427343 }
 0xad5   :  { %v1619_v52 = vsel %vm1618_vm3, %v1616_v62, %v1613_v60 }
 0xad6   :  { %v1621_v15 = vadd.f32 %v1619_v52, %v1589_v2  ;;  %v1607_v7 = vmul.f32 %v1925_v50, %v1606_v3  ;;  %v1839_v3 = vld [vmem:[%s2783_s19] ss:$0 sm:$0xff] }
 0xad8   :  { %v1623_v13 = vsel %vm1591_vm4, %v2321_v41, %v1621_v15 }
 0xada   :  { %v1929_v32 = vpop.eup %1928 }
 0xadb   :  { %v1604_v42 = vmul.f32 0.6931472, %v1929_v32 }
 0xadd   :  { %v1610_v20 = vsel %vm1609_vm5, %v1607_v7, %v1604_v42 }
 0xade   :  { %v1620_v39 = vadd.f32 %v1610_v20, %v1588_v17 }
 0xae1   :  { %v1037_v40 = vpop.xlane.xlu1 %1036 }
 0xae2   :  { %v1039_v8 = vmul.f32 %v1037_v40, %v2340_v36  ;;  %v1622_v36 = vsel %vm1590_vm6, %v2235_v21, %v1620_v39 }
 0xae4   :  { %v1041_v9 = vadd.f32 1e-05, %v1039_v8 }
 0xae6   :  { %1930 = vrsqrt.f32 %v1041_v9  ;;  %vm1058_vm1 = vweird.f32 %v1041_v9 }
 0xae7   :  { %1932 = vtanh.f32 %v1623_v13 }
 0xae8   :  { %1934 = vtanh.f32 %v1622_v36 }
 0xae9   :  { %v1822_v14 = vpop.permute.xlu2 %1821 }
 0xaea   :  { %v1824_v22 = vunpack.i.h.bf16 %v1822_v14  ;;  %v1823_v4 = vunpack.i.l.bf16 %v1822_v14 }
 0xaec   :  { %v1931_v25 = vpop.eup %1930  ;;  %v1463_v26 = vsel %vm107_vm0, %v1823_v4, %v1824_v22 }
 0xaed   :  { %v1933_v27 = vpop.eup %1932  ;;  %v1053_v29 = vmul.f32 %v1931_v25, %v1041_v9  ;;  %1483 = vmatmul.f32.vlgmr.msrb.gmra.mxu3 %v1463_v26  ;;  %vm1059_vm7 = vweird.f32 %v1931_v25 }
 0xaee   :  { %v1627_v0 = vmul.f32 %v1933_v27, %v2321_v41  ;;  %v1935_v34 = vpop.eup %1934  ;;  %vm1060_vm8 = vmor %vm1058_vm1, %vm1059_vm7 }
 0xaef   :  { %v1054_v30 = vmul.f32 %v1931_v25, %v1053_v29  ;;  %v1626_v11 = vmul.f32 %v1935_v34, %v2235_v21 }
 0xaf1   :  { %v1055_v31 = vmul.f32 0.5, %v1054_v30  ;;  %v1631_v5 = vpop.permute.xlu2 %1630 }
 0xaf2   :  { %v2638_v33 = vadd.f32 %v1631_v5, %v1627_v0 }
 0xaf3   :  { %v1056_v1 = vsub.f32 1.5, %v1055_v31 }
 0xaf4   :  { %1642 = vrot.lane.b32.xlu2 %v2638_v33, %s2032_s6 }
 0xaf5   :  { %v1057_v35 = vmul.f32 %v1931_v25, %v1056_v1 }
 0xaf7   :  { %v1061_v43 = vsel %vm1060_vm8, %v1931_v25, %v1057_v35 }
 0xaf8   :  { %v1063_v38 = vmul.f32 %v1061_v43, %v2467_v24 }
 0xaf9   :  { %v1629_v37 = vpop.permute.xlu1 %1628 }
 0xafa   :  { %v1068_v41 = vmul.f32 %v2550_v57, %v1063_v38  ;;  %v2645_v44 = vadd.f32 %v1629_v37, %v1626_v11  ;;  %v1827_v45 = vpop.permute.xlu0 %1826 }
 0xafb   :  { %v1829_v47 = vunpack.i.h.bf16 %v1827_v45  ;;  %v1828_v48 = vunpack.i.l.bf16 %v1827_v45 }
 0xafc   :  { %v1073_v46 = vadd.f32 %v2558_v61, %v1068_v41  ;;  %1640 = vrot.lane.b32.xlu0 %v2645_v44, %s2032_s6 }
 0xafd   :  { %v1464_v19 = vsel %vm107_vm0, %v1828_v48, %v1829_v47 }
 0xafe   :  { %v1081_v10 = vand.u32 2147483647, %v1073_v46  ;;  %1486 = vmatmul.f32.gmra.mxu3 %v1464_v19  ;;  %v1075_v55 = vmax.f32 %v1073_v46, 0.0  ;;  %vm1077_vm10 = vcmp.ne.f32.partialorder %v1073_v46, %v1073_v46 }
 0xb00   :  { %v1083_v24 = vsub.f32 0.0, %v1081_v10 }
 0xb02   :  { %v1086_v23 = vmul.f32 1.442695, %v1083_v24 }
 0xb04   :  { %1936 = vpow2.f32 %v1086_v23 }
 0xb0a   :  { %v1937_v21 = vpop.eup %1936 }
 0xb0b   :  { %v1097_v49 = vadd.f32 1.0, %v1937_v21  ;;  %v1100_v57 = vmul.f32 -0.5, %v1937_v21  ;;  %v1103_v51 = vand.u32 2147483647, %v1937_v21 }
 0xb0d   :  { %1938 = vlog2.f32 %v1097_v49  ;;  %v1101_v50 = vadd.f32 1.0, %v1100_v57  ;;  %vm1104_vm9 = vcmp.lt.f32.partialorder %v1103_v51, 0.0004427343 }
 0xb0f   :  { %v1102_v54 = vmul.f32 %v1937_v21, %v1101_v50  ;;  %v1838_v50 = vld [vmem:[%s2777_s13] ss:$0 sm:$0xff] }
 0xb13   :  { %v1939_v53 = vpop.eup %1938 }
 0xb14   :  { %v1099_v61 = vmul.f32 0.6931472, %v1939_v53 }
 0xb16   :  { %v1105_v56 = vsel %vm1104_vm9, %v1102_v54, %v1099_v61 }
 0xb17   :  { %v1107_v59 = vadd.f32 %v1105_v56, %v1075_v55 }
 0xb19   :  { %v1109_v60 = vsel %vm1077_vm10, %v1073_v46, %v1107_v59 }
 0xb1a   :  { %1940 = vtanh.f32 %v1109_v60 }
 0xb20   :  { %v1941_v62 = vpop.eup %1940 }
 0xb21   :  { %v1113_v63 = vmul.f32 %v1941_v62, %v1073_v46 }
 0xb23   :  { %1153 = vmatmul.f32.gmra.mxu2 %v1113_v63 }
 0xb4e   :  { %v1643_v2 = vpop.permute.xlu2 %1642 }
 0xb4f   :  { %v1649_v52 = vsel %vm107_vm0, %v1643_v2, 0.0 }
 0xb50   :  { %1650 = vadd.xlane.f32.xlu2 %v1649_v52 }
 0xb56   :  { %v1151_v51 = vpop.f32.mrf.mxu2 }
 0xb57   :  { %v1152_v53 = vadd.f32 %v1838_v50, %v1151_v51 }
 0xb59   :  { %v1163_v61 = vand.u32 2147483647, %v1152_v53  ;;  %vm1159_vm2 = vcmp.ne.f32.partialorder %v1152_v53, %v1152_v53 }
 0xb5b   :  { %v1165_v54 = vsub.f32 0.0, %v1163_v61 }
 0xb5d   :  { %v1167_v55 = vmul.f32 1.442695, %v1165_v54 }
 0xb6e   :  { %v1641_v32 = vpop.permute.xlu0 %1640 }
 0xb6f   :  { %v1646_v6 = vsel %vm107_vm0, %v1641_v32, 0.0 }
 0xb70   :  { %v1484_v15 = vpop.f32.mrf.mxu3  ;;  %1647 = vadd.xlane.f32.xlu0 %v1646_v6 }
 0xb71   :  { %v1485_v40 = vadd.f32 %v1839_v3, %v1484_v15 }
 0xb73   :  { %v1496_v42 = vand.u32 2147483647, %v1485_v40  ;;  %v1490_v30 = vmax.f32 %v1485_v40, 0.0  ;;  %vm1492_vm12 = vcmp.ne.f32.partialorder %v1485_v40, %v1485_v40 }
 0xb75   :  { %v1498_v7 = vsub.f32 0.0, %v1496_v42 }
 0xb77   :  { %v1500_v8 = vmul.f32 1.442695, %v1498_v7 }
 0xb79   :  { %1942 = vpow2.f32 %v1500_v8 }
 0xb7f   :  { %v1943_v9 = vpop.eup %1942 }
 0xb80   :  { %v1504_v13 = vadd.f32 1.0, %v1943_v9  ;;  %v1507_v17 = vmul.f32 -0.5, %v1943_v9  ;;  %v1510_v4 = vand.u32 2147483647, %v1943_v9 }
 0xb81   :  { %v1487_v20 = vpop.f32.mrf.mxu3 }
 0xb82   :  { %1944 = vlog2.f32 %v1504_v13  ;;  %v1488_v39 = vadd.f32 %v1839_v3, %v1487_v20  ;;  %v1508_v14 = vadd.f32 1.0, %v1507_v17  ;;  %vm1511_vm11 = vcmp.lt.f32.partialorder %v1510_v4, 0.0004427343 }
 0xb84   :  { %v1497_v22 = vand.u32 2147483647, %v1488_v39  ;;  %v1509_v27 = vmul.f32 %v1943_v9, %v1508_v14  ;;  %v1491_v10 = vmax.f32 %v1488_v39, 0.0  ;;  %vm1493_vm14 = vcmp.ne.f32.partialorder %v1488_v39, %v1488_v39 }
 0xb85   :  { %v1157_v9 = vmax.f32 %v1152_v53, 0.0 }
 0xb86   :  { %v1499_v25 = vsub.f32 0.0, %v1497_v22 }
 0xb88   :  { %v1945_v26 = vpop.eup %1944  ;;  %v1502_v29 = vmul.f32 1.442695, %v1499_v25 }
 0xb89   :  { %v1506_v36 = vmul.f32 0.6931472, %v1945_v26 }
 0xb8a   :  { %1946 = vpow2.f32 %v1502_v29 }
 0xb8b   :  { %v1512_v0 = vsel %vm1511_vm11, %v1509_v27, %v1506_v36 }
 0xb8c   :  { %v1522_v31 = vadd.f32 %v1512_v0, %v1490_v30 }
 0xb8e   :  { %v1524_v5 = vsel %vm1492_vm12, %v1485_v40, %v1522_v31 }
 0xb8f   :  { %1948 = vtanh.f32 %v1524_v5 }
 0xb90   :  { %v1947_v1 = vpop.eup %1946 }
 0xb91   :  { %v1513_v34 = vadd.f32 1.0, %v1947_v1  ;;  %v1516_v35 = vmul.f32 -0.5, %v1947_v1  ;;  %v1519_v37 = vand.u32 2147483647, %v1947_v1 }
 0xb93   :  { %1950 = vlog2.f32 %v1513_v34  ;;  %v1517_v11 = vadd.f32 1.0, %v1516_v35  ;;  %vm1520_vm13 = vcmp.lt.f32.partialorder %v1519_v37, 0.0004427343 }
 0xb95   :  { %v1949_v43 = vpop.eup %1948  ;;  %v1518_v48 = vmul.f32 %v1947_v1, %v1517_v11 }
 0xb96   :  { %v1528_v38 = vmul.f32 %v1949_v43, %v1485_v40 }
 0xb98   :  { %v2657_v41 = vadd.f32 %v2492_v28, %v1528_v38 }
 0xb99   :  { %v1951_v45 = vpop.eup %1950 }
 0xb9a   :  { %v1534_v46 = vsel %vm107_vm0, %v2657_v41, 0.0  ;;  %v1515_v47 = vmul.f32 0.6931472, %v1951_v45 }
 0xb9b   :  { %1535 = vadd.xlane.f32.xlu2 %v1534_v46 }
 0xb9c   :  { %v1521_v19 = vsel %vm1520_vm13, %v1518_v48, %v1515_v47 }
 0xb9d   :  { %v1523_v24 = vadd.f32 %v1521_v19, %v1491_v10 }
 0xb9f   :  { %v1525_v23 = vsel %vm1493_vm14, %v1488_v39, %v1523_v24  ;;  %v1840_v24 = vld [vmem:[%s2786_s22] ss:$0 sm:$0xff]  ;;  %s1796_s22 = sld [smem:[#allocation2 + $0x2]] }
 0xba0   :  { %1952 = vtanh.f32 %v1525_v23  ;;  %v1841_v23 = vld [vmem:[%s2787_s23] ss:$0 sm:$0xff]  ;;  %s2733_s23 = sld [smem:[#allocation2 + $0x1]] }
 0xba1   :  { %1954 = vpow2.f32 %v1167_v55 }
 0xba6   :  { %v1953_v21 = vpop.eup %1952  ;;  %v1154_v22 = vpop.f32.mrf.mxu2 }
 0xba7   :  { %v1529_v49 = vmul.f32 %v1953_v21, %v1488_v39  ;;  %v1955_v2 = vpop.eup %1954  ;;  %v1155_v4 = vadd.f32 %v1838_v50, %v1154_v22 }
 0xba8   :  { %v1171_v3 = vadd.f32 1.0, %v1955_v2  ;;  %v1177_v40 = vand.u32 2147483647, %v1955_v2 }
 0xba9   :  { %v2662_v57 = vadd.f32 %v2513_v16, %v1529_v49  ;;  %v1164_v25 = vand.u32 2147483647, %v1155_v4  ;;  %v1158_v35 = vmax.f32 %v1155_v4, 0.0  ;;  %vm1160_vm4 = vcmp.ne.f32.partialorder %v1155_v4, %v1155_v4 }
 0xbaa   :  { %1956 = vlog2.f32 %v1171_v3  ;;  %vm1178_vm15 = vcmp.lt.f32.partialorder %v1177_v40, 0.0004427343 }
 0xbab   :  { %v1537_v28 = vsel %vm107_vm0, %v2662_v57, 0.0  ;;  %v1166_v26 = vsub.f32 0.0, %v1164_v25 }
 0xbac   :  { %1538 = vadd.xlane.f32.xlu0 %v1537_v28 }
 0xbad   :  { %v1169_v36 = vmul.f32 1.442695, %v1166_v26 }
 0xbb0   :  { %v1957_v6 = vpop.eup %1956 }
 0xbb1   :  { %v1173_v42 = vmul.f32 0.6931472, %v1957_v6 }
 0xbc3   :  { %v1651_v60 = vpop.xlane.xlu2 %1650 }
 0xbc4   :  { %v1653_v62 = vmul.f32 %v1651_v60, %v2366_v18 }
 0xbc6   :  { %v2678_v52 = vsub.f32 %v2638_v33, %v1653_v62 }
 0xbc8   :  { %v1657_v32 = vmul.f32 %v2678_v52, %v2678_v52 }
 0xbe3   :  { %v1648_v56 = vpop.xlane.xlu0 %1647 }
 0xbe4   :  { %v1652_v59 = vmul.f32 %v1648_v56, %v2366_v18 }
 0xbe6   :  { %v2671_v16 = vsub.f32 %v2645_v44, %v1652_v59  ;;  %v1174_v44 = vmul.f32 -0.5, %v1955_v2 }
 0xbe8   :  { %v1656_v63 = vmul.f32 %v2671_v16, %v2671_v16  ;;  %v1175_v15 = vadd.f32 1.0, %v1174_v44 }
 0xbea   :  { %1660 = vrot.lane.b32.xlu1 %v1656_v63, %s2032_s6  ;;  %v1176_v7 = vmul.f32 %v1955_v2, %v1175_v15 }
 0xbec   :  { %v1179_v8 = vsel %vm1178_vm15, %v1176_v7, %v1173_v42 }
 0xbed   :  { %v1189_v13 = vadd.f32 %v1179_v8, %v1157_v9 }
 0xbef   :  { %v1191_v33 = vsel %vm1159_vm2, %v1152_v53, %v1189_v13 }
 0xbf0   :  { %1958 = vtanh.f32 %v1191_v33 }
 0xbf1   :  { %1960 = vpow2.f32 %v1169_v36 }
 0xbf2   :  { %1662 = vrot.lane.b32.xlu1 %v1657_v32, %s2032_s6 }
 0xbf6   :  { %v1959_v17 = vpop.eup %1958 }
 0xbf7   :  { %v1195_v20 = vmul.f32 %v1959_v17, %v1152_v53  ;;  %v1961_v27 = vpop.eup %1960 }
 0xbf8   :  { %v1180_v29 = vadd.f32 1.0, %v1961_v27  ;;  %v1183_v30 = vmul.f32 -0.5, %v1961_v27  ;;  %v1186_v5 = vand.u32 2147483647, %v1961_v27 }
 0xbf9   :  { %v1197_v39 = vadd.f32 %v1195_v20, %v2397_v58 }
 0xbfa   :  { %1962 = vlog2.f32 %v1180_v29  ;;  %v1184_v31 = vadd.f32 1.0, %v1183_v30  ;;  %vm1187_vm3 = vcmp.lt.f32.partialorder %v1186_v5, 0.0004427343  ;;  %v1723_v30 = vstv %s1796_s22 }
 0xbfb   :  { %v1201_v14 = vsel %vm107_vm0, %v1197_v39, 0.0 }
 0xbfc   :  { %v1185_v34 = vmul.f32 %v1961_v27, %v1184_v31 }
 0xc00   :  { %v1963_v0 = vpop.eup %1962 }
 0xc01   :  { %v1182_v1 = vmul.f32 0.6931472, %v1963_v0 }
 0xc03   :  { %v1188_v58 = vsel %vm1187_vm3, %v1185_v34, %v1182_v1 }
 0xc04   :  { %v1190_v43 = vadd.f32 %v1188_v58, %v1158_v35 }
 0xc06   :  { %v1192_v38 = vsel %vm1160_vm4, %v1155_v4, %v1190_v43 }
 0xc07   :  { %1964 = vtanh.f32 %v1192_v38 }
 0xc0d   :  { %v1965_v45 = vpop.eup %1964 }
 0xc0e   :  { %v1196_v48 = vmul.f32 %v1965_v45, %v1155_v4  ;;  %v1536_v55 = vpop.xlane.xlu2 %1535 }
 0xc0f   :  { %v1540_v59 = vmul.f32 %v1536_v55, %v2366_v18 }
 0xc10   :  { %v2688_v10 = vadd.f32 %v1196_v48, %v2415_v12 }
 0xc11   :  { %v2715_v60 = vsub.f32 %v2657_v41, %v1540_v59 }
 0xc12   :  { %v1204_v19 = vsel %vm107_vm0, %v2688_v10, 0.0 }
 0xc13   :  { %v1544_v62 = vmul.f32 %v2715_v60, %v2715_v60 }
 0xc1c   :  { %1202 = vadd.xlane.f32.xlu1 %v1201_v14 }
 0xc1f   :  { %v1539_v21 = vpop.xlane.xlu0 %1538 }
 0xc20   :  { %v1541_v28 = vmul.f32 %v1539_v21, %v2366_v18  ;;  %v1845_v21 = vld [vmem:[%s2785_s21] ss:$0 sm:$0xff] }
 0xc22   :  { %v2707_v53 = vsub.f32 %v2662_v57, %v1541_v28  ;;  %v1546_v57 = vsel %vm107_vm0, %v1544_v62, 0.0 }
 0xc24   :  { %v1545_v54 = vmul.f32 %v2707_v53, %v2707_v53 }
 0xc26   :  { %v1549_v56 = vsel %vm107_vm0, %v1545_v54, 0.0 }
 0xc5c   :  { %v1661_v11 = vpop.permute.xlu1 %1660 }
 0xc5d   :  { %v1666_v37 = vsel %vm107_vm0, %v1661_v11, 0.0 }
 0xc5e   :  { %1667 = vadd.xlane.f32.xlu2 %v1666_v37 }
 0xc64   :  { %v1663_v46 = vpop.permute.xlu1 %1662 }
 0xc65   :  { %v1669_v47 = vsel %vm107_vm0, %v1663_v46, 0.0 }
 0xc66   :  { %1670 = vadd.xlane.f32.xlu0 %v1669_v47 }
 0xc6e   :  { %1205 = vadd.xlane.f32.xlu0 %v1204_v19 }
 0xc76   :  { %1700 = vrot.lane.b32.xlu2 %v1840_v24, %s2022_s28 }
 0xc82   :  { %1707 = vrot.lane.b32.xlu0 %v1841_v23, %s2022_s28 }
 0xc8f   :  { %v1203_v49 = vpop.xlane.xlu1 %1202 }
 0xc90   :  { %v1207_v12 = vmul.f32 %v1203_v49, %v2366_v18 }
 0xc92   :  { %v2702_v50 = vsub.f32 %v1197_v39, %v1207_v12  ;;  %v1717_v12 = vstv %s2733_s23 }
 0xc94   :  { %v1211_v51 = vmul.f32 %v2702_v50, %v2702_v50 }
 0xc96   :  { %v1213_v61 = vsel %vm107_vm0, %v1211_v51, 0.0 }
 0xc97   :  { %1214 = vadd.xlane.f32.xlu1 %v1213_v61 }
 0xc9f   :  { %1550 = vadd.xlane.f32.xlu2 %v1549_v56 }
 0xcac   :  { %1547 = vadd.xlane.f32.xlu0 %v1546_v57 }
 0xcd1   :  { %v1668_v63 = vpop.xlane.xlu2 %1667 }
 0xcd2   :  { %v1672_v2 = vmul.f32 %v1668_v63, %v2366_v18 }
 0xcd4   :  { %v1674_v3 = vadd.f32 1e-05, %v1672_v2 }
 0xcd6   :  { %1966 = vrsqrt.f32 %v1674_v3  ;;  %vm1682_vm6 = vweird.f32 %v1674_v3 }
 0xcd9   :  { %v1671_v32 = vpop.xlane.xlu0 %1670  ;;  %v1701_v36 = vpop.permute.xlu2 %1700 }
 0xcda   :  { %v1673_v44 = vmul.f32 %v1671_v32, %v2366_v18 }
 0xcdc   :  { %v1967_v6 = vpop.eup %1966  ;;  %v1675_v15 = vadd.f32 1e-05, %v1673_v44 }
 0xcdd   :  { %v1677_v40 = vmul.f32 %v1967_v6, %v1674_v3  ;;  %vm1683_vm5 = vweird.f32 %v1967_v6 }
 0xcde   :  { %1968 = vrsqrt.f32 %v1675_v15  ;;  %vm1684_vm7 = vmor %vm1682_vm6, %vm1683_vm5  ;;  %vm1692_vm8 = vweird.f32 %v1675_v15 }
 0xcdf   :  { %v1678_v41 = vmul.f32 %v1967_v6, %v1677_v40 }
 0xce1   :  { %v1679_v42 = vmul.f32 0.5, %v1678_v41  ;;  %v1206_v39 = vpop.xlane.xlu0 %1205 }
 0xce2   :  { %v1208_v38 = vmul.f32 %v1206_v39, %v2366_v18  ;;  %v1843_v39 = vld [vmem:[%s2779_s15] ss:$0 sm:$0xff] }
 0xce3   :  { %v1680_v8 = vsub.f32 1.5, %v1679_v42 }
 0xce4   :  { %v1969_v7 = vpop.eup %1968 }
 0xce5   :  { %v1687_v9 = vmul.f32 %v1969_v7, %v1675_v15  ;;  %v1681_v33 = vmul.f32 %v1967_v6, %v1680_v8  ;;  %vm1693_vm1 = vweird.f32 %v1969_v7 }
 0xce6   :  { %vm1694_vm9 = vmor %vm1692_vm8, %vm1693_vm1 }
 0xce7   :  { %v1688_v13 = vmul.f32 %v1969_v7, %v1687_v9  ;;  %v1685_v14 = vsel %vm1684_vm7, %v1967_v6, %v1681_v33  ;;  %v1842_v33 = vld [vmem:[%s2778_s14] ss:$0 sm:$0xff]  ;;  %s2035_s14 = smov [#allocation5]  }
 0xce8   :  { %v1696_v25 = vmul.f32 %v1685_v14, %v2671_v16  ;;  %v2728_v16 = vsub.f32 %v2688_v10, %v1208_v38  ;;  %v1844_v10 = vld [vmem:[%s2784_s20] ss:$0 sm:$0xff]  ;;  %s1742_s15 = sshll.u32 %s2035_s14, 4  ;;  %s1743_s15 = int_to_ptr.vmem [resolvable:$true] %s1742_s15 }
 0xce9   :  { %v1689_v17 = vmul.f32 0.5, %v1688_v13 }
 0xcea   :  { %v1703_v29 = vmul.f32 %v1701_v36, %v1696_v25  ;;  %v1212_v37 = vmul.f32 %v2728_v16, %v2728_v16 }
 0xceb   :  { %v1690_v20 = vsub.f32 1.5, %v1689_v17 }
 0xcec   :  { %v1216_v47 = vsel %vm107_vm0, %v1212_v37, 0.0 }
 0xced   :  { %v1691_v22 = vmul.f32 %v1969_v7, %v1690_v20 }
 0xcef   :  { %v1695_v4 = vsel %vm1694_vm9, %v1969_v7, %v1691_v22 }
 0xcf0   :  { %v1697_v26 = vmul.f32 %v1695_v4, %v2678_v52 }
 0xcf2   :  { %v1704_v27 = vmul.f32 %v1701_v36, %v1697_v26 }
 0xcf4   :  { %v1708_v0 = vpop.permute.xlu0 %1707 }
 0xcf5   :  { %v1710_v31 = vadd.f32 %v1708_v0, %v1703_v29  ;;  %v1711_v5 = vadd.f32 %v1708_v0, %v1704_v27 }
 0xcf7   :  { %v1724_v1 = vmul.f32 %v1723_v30, %v1710_v31  ;;  %v1725_v34 = vmul.f32 %v1723_v30, %v1711_v5 }
 0xcf9   :  { %1728 = vrot.lane.b32.xlu1 %v1724_v1, %s2032_s6 }
 0xd0a   :  { %v1215_v54 = vpop.xlane.xlu1 %1214 }
 0xd0b   :  { %v1219_v56 = vmul.f32 %v1215_v54, %v2366_v18 }
 0xd0d   :  { %v1221_v62 = vadd.f32 1e-05, %v1219_v56 }
 0xd0f   :  { %vm1229_vm3 = vweird.f32 %v1221_v62 }
 0xd12   :  { %v1551_v58 = vpop.xlane.xlu2 %1550 }
 0xd13   :  { %v1553_v35 = vmul.f32 %v1551_v58, %v2366_v18 }
 0xd15   :  { %v1555_v43 = vadd.f32 1e-05, %v1553_v35 }
 0xd17   :  { %1970 = vrsqrt.f32 %v1555_v43  ;;  %vm1572_vm11 = vweird.f32 %v1555_v43 }
 0xd1d   :  { %v1971_v52 = vpop.eup %1970 }
 0xd1e   :  { %v1567_v11 = vmul.f32 %v1971_v52, %v1555_v43  ;;  %vm1573_vm10 = vweird.f32 %v1971_v52 }
 0xd1f   :  { %vm1574_vm12 = vmor %vm1572_vm11, %vm1573_vm10  ;;  %v1548_v51 = vpop.xlane.xlu0 %1547 }
 0xd20   :  { %v1568_v45 = vmul.f32 %v1971_v52, %v1567_v11  ;;  %v1552_v55 = vmul.f32 %v1548_v51, %v2366_v18 }
 0xd22   :  { %v1569_v46 = vmul.f32 0.5, %v1568_v45  ;;  %v1554_v59 = vadd.f32 1e-05, %v1552_v55 }
 0xd23   :  { %1217 = vadd.xlane.f32.xlu1 %v1216_v47 }
 0xd24   :  { %v1570_v48 = vsub.f32 1.5, %v1569_v46  ;;  %1972 = vrsqrt.f32 %v1554_v59  ;;  %vm1562_vm15 = vweird.f32 %v1554_v59 }
 0xd25   :  { %1974 = vrsqrt.f32 %v1221_v62 }
 0xd26   :  { %v1571_v19 = vmul.f32 %v1971_v52, %v1570_v48 }
 0xd28   :  { %v1575_v24 = vsel %vm1574_vm12, %v1971_v52, %v1571_v19 }
 0xd29   :  { %v1577_v23 = vmul.f32 %v1575_v24, %v2707_v53 }
 0xd2a   :  { %v1973_v53 = vpop.eup %1972 }
 0xd2b   :  { %v1582_v49 = vmul.f32 %v1844_v10, %v1577_v23  ;;  %v1975_v57 = vpop.eup %1974  ;;  %v1557_v63 = vmul.f32 %v1973_v53, %v1554_v59  ;;  %vm1563_vm13 = vweird.f32 %v1973_v53 }
 0xd2c   :  { %v1224_v2 = vmul.f32 %v1975_v57, %v1221_v62  ;;  %vm1230_vm14 = vweird.f32 %v1975_v57  ;;  %vm1564_vm2 = vmor %vm1562_vm15, %vm1563_vm13 }
 0xd2d   :  { %v1587_v28 = vadd.f32 %v1845_v21, %v1582_v49  ;;  %v1558_v3 = vmul.f32 %v1973_v53, %v1557_v63  ;;  %vm1231_vm4 = vmor %vm1229_vm3, %vm1230_vm14 }
 0xd2e   :  { %v1225_v32 = vmul.f32 %v1975_v57, %v1224_v2 }
 0xd2f   :  { %v2743_v61 = vmul.f32 %v1717_v12, %v1587_v28  ;;  %v1559_v44 = vmul.f32 0.5, %v1558_v3 }
 0xd30   :  { %v1226_v6 = vmul.f32 0.5, %v1225_v32 }
 0xd31   :  { %v1560_v15 = vsub.f32 1.5, %v1559_v44 }
 0xd32   :  { %v1227_v40 = vsub.f32 1.5, %v1226_v6 }
 0xd33   :  { %v1561_v41 = vmul.f32 %v1973_v53, %v1560_v15 }
 0xd34   :  { %v1228_v42 = vmul.f32 %v1975_v57, %v1227_v40 }
 0xd35   :  { %v1565_v7 = vsel %vm1564_vm2, %v1973_v53, %v1561_v41 }
 0xd36   :  { %v1232_v8 = vsel %vm1231_vm4, %v1975_v57, %v1228_v42  ;;  %v1576_v9 = vmul.f32 %v1565_v7, %v2715_v60 }
 0xd37   :  { %v1243_v13 = vmul.f32 %v1232_v8, %v2702_v50 }
 0xd38   :  { %v1581_v17 = vmul.f32 %v1844_v10, %v1576_v9 }
 0xd39   :  { %v1248_v20 = vmul.f32 %v1842_v33, %v1243_v13 }
 0xd3a   :  { %v1586_v14 = vadd.f32 %v1845_v21, %v1581_v17 }
 0xd3b   :  { %v1253_v22 = vadd.f32 %v1843_v39, %v1248_v20 }
 0xd3c   :  { %1730 = vrot.lane.b32.xlu1 %v1725_v34, %s2032_s6  ;;  %s1712_s6 = sld [smem:[#allocation2]]  ;;  %v1718_v25 = vmul.f32 %v1717_v12, %v1586_v14 }
 0xd42   :  { %v1713_v4 = vstv %s1712_s6 }
 0xd43   :  { %v1714_v26 = vmul.f32 %v1713_v4, %v1253_v22 }
 0xd45   :  { %v1720_v36 = vadd.f32 %v1718_v25, %v1714_v26 }
 0xd6b   :  { %v1729_v60 = vpop.permute.xlu1 %1728 }
 0xd6c   :  { %v1734_v27 = vadd.f32 %v1729_v60, %v1720_v36 }
 0xd6e   :  { %1736 = vst.msk [vmem:[#allocation5] sm:$0xff] %vm107_vm0, %v1734_v27 }
 0xd96   :  { %v1218_v50 = vpop.xlane.xlu1 %1217 }
 0xd97   :  { %v1220_v29 = vmul.f32 %v1218_v50, %v2366_v18 }
 0xd99   :  { %v1222_v30 = vadd.f32 1e-05, %v1220_v29 }
 0xd9b   :  { %1976 = vrsqrt.f32 %v1222_v30  ;;  %vm1239_vm6 = vweird.f32 %v1222_v30 }
 0xda1   :  { %v1977_v0 = vpop.eup %1976 }
 0xda2   :  { %v1234_v31 = vmul.f32 %v1977_v0, %v1222_v30  ;;  %vm1240_vm5 = vweird.f32 %v1977_v0 }
 0xda3   :  { %vm1241_vm7 = vmor %vm1239_vm6, %vm1240_vm5 }
 0xda4   :  { %v1235_v5 = vmul.f32 %v1977_v0, %v1234_v31 }
 0xda6   :  { %v1236_v1 = vmul.f32 0.5, %v1235_v5 }
 0xda8   :  { %v1237_v34 = vsub.f32 1.5, %v1236_v1 }
 0xdaa   :  { %v1238_v58 = vmul.f32 %v1977_v0, %v1237_v34 }
 0xdac   :  { %v1242_v35 = vsel %vm1241_vm7, %v1977_v0, %v1238_v58 }
 0xdad   :  { %v1244_v43 = vmul.f32 %v1242_v35, %v2728_v16 }
 0xdae   :  { %v1731_v37 = vpop.permute.xlu1 %1730 }
 0xdaf   :  { %v1249_v38 = vmul.f32 %v1842_v33, %v1244_v43 }
 0xdb1   :  { %v1254_v52 = vadd.f32 %v1843_v39, %v1249_v38 }
 0xdb3   :  { %v1715_v11 = vmul.f32 %v1713_v4, %v1254_v52 }
 0xdb5   :  { %v1721_v18 = vadd.f32 %v2743_v61, %v1715_v11 }
 0xdb7   :  { %v1735_v45 = vadd.f32 %v1731_v37, %v1721_v18 }
 0xdb9   :  { %1737 = vst.msk [vmem:[#allocation5 + $0x8] sm:$0xff] %vm107_vm0, %v1735_v45 }
 0xdba   :  { %1750 = dma.vmem_to_hbm [thread:$0]  %s1743_s15, 256, %s1745_s29, [#allocation3], %s2036_s9, %s2036_s9, %s2037_s7  }
 0xdbb   :  { %2018 = dma.done.wait [#allocation3], 256  }
 0xdbc   :  { %2019 = vsyncadd [#allocation3], 4294967040 }
 0xdbd   :  { %1755 = vsyncpa [#allocation3], 1 }
 0xdbe   :  { %1756 = vsyncpa [#allocation4], 1 }

</bundles_post_ra>
